<compile_context>
chip_gen: v7x
topology: tpu7x:2x2x1
jax: 0.10.0
libtpu: 0.0.40
codegen_flags: <defaults>
</compile_context>

<pallas_src>
import functools

import jax
import jax.numpy as jnp
from jax.experimental import pallas as pl
from jax.experimental.pallas import tpu as pltpu


_SMALL_BYTES = 256 * 1024                 # below this, skip pallas_call entirely
_TILE_BYTES_TARGET = 8 * 1024 * 1024      # ~8 MiB of native dtype per streamed tile
_VMEM_LIMIT_BYTES = 48 * 1024 * 1024      # double-buffered tiles + f32 temps headroom
_COL_CANDIDATES = (1024, 512, 256, 128)   # lane-dense column widths (multiples of 128)


def _abs_sum_kernel(w_ref, out_ref, acc_ref, *, total_g, g_block, steps_per_core):
    """Accumulate sum(|w|) of one weight tensor presented as (G, S, C).

    Grid = (core_split, steps_per_core); axis 0 is parallel (v7x megacore), axis 1 is
    the sequential streaming axis.  acc_ref is a per-core (S, C) f32 accumulator; the
    only cross-lane reduce + SMEM scalar write happens once per core at the last step.
    """
    c = pl.program_id(0)          # core split (parallel)
    i = pl.program_id(1)          # sequential tile index within this core

    @pl.when(i == 0)
    def _init():
        acc_ref[...] = jnp.zeros_like(acc_ref)

    gstep = c * steps_per_core + i
    # Slabs of this tile that actually exist (<=0 for clamped overflow steps).
    valid_g = total_g - gstep * g_block

    @pl.when(valid_g >= g_block)
    def _full_tile():
        # Fast path (every interior tile): abs in native dtype, cast, VPU adds only.
        a = jnp.abs(w_ref[...]).astype(jnp.float32)      # (g_block, S, C)
        acc_ref[...] += jnp.sum(a, axis=0)               # leading-axis reduce: pure VPU

    @pl.when(valid_g < g_block)
    def _partial_tile():
        # Rare ragged/overflow tile: walk only the valid slabs (no iota/where pass).
        def body(k, carry):
            acc_ref[...] += jnp.abs(w_ref[k]).astype(jnp.float32)
            return carry
        jax.lax.fori_loop(0, jnp.maximum(valid_g, 0), body, 0)

    @pl.when(i == pl.num_programs(1) - 1)
    def _finalize():
        out_ref[0, 0] = jnp.sum(acc_ref[...])            # single XLU reduce per core


def _abs_sum_grouped(w3d, *, g_block=None, force_core_split=None):
    """sum(|w3d|) as an f32 scalar for a (G, S, C) lane-dense view, via Pallas.

    g_block / force_core_split are test overrides to exercise the tiled, masked and
    core-split paths at small shapes.
    """
    G, S, C = w3d.shape
    itemsize = w3d.dtype.itemsize
    slab_bytes = S * C * itemsize                      # <= 32 KiB by construction

    if g_block is None:
        g_block = max(1, _TILE_BYTES_TARGET // slab_bytes)
    g_block = int(max(1, min(g_block, G)))

    num_blocks = pl.cdiv(G, g_block)
    if force_core_split is not None:
        core_split = int(force_core_split)
    else:
        # Only split across TensorCores when there is more than one block; otherwise a
        # second (clamped) sweep would just re-read the whole tensor from HBM.
        core_split = 2 if num_blocks >= 2 else 1
    steps_per_core = pl.cdiv(num_blocks, core_split)

    kernel = functools.partial(
        _abs_sum_kernel,
        total_g=G,
        g_block=g_block,
        steps_per_core=steps_per_core,
    )

    def in_map(c, i):
        # Clamp so overflow steps re-read the last tile; the kernel masks them to 0.
        return (jnp.minimum(c * steps_per_core + i, num_blocks - 1), 0, 0)

    partials = pl.pallas_call(
        kernel,
        out_shape=jax.ShapeDtypeStruct((core_split, 1), jnp.float32),
        grid_spec=pltpu.PrefetchScalarGridSpec(
            num_scalar_prefetch=0,
            grid=(core_split, steps_per_core),
            in_specs=[pl.BlockSpec((g_block, S, C), in_map)],
            out_specs=pl.BlockSpec(
                (1, 1), lambda c, i: (c, 0), memory_space=pltpu.SMEM
            ),
            scratch_shapes=[pltpu.VMEM((S, C), jnp.float32)],
        ),
        compiler_params=pltpu.CompilerParams(
            dimension_semantics=("parallel", "arbitrary"),
            vmem_limit_bytes=_VMEM_LIMIT_BYTES,
        ),
    )(w3d)
    return jnp.sum(partials)


def _grouped_view(w):
    """Free (bitcast) lane/sublane-dense (G, S, C) view of a weight, or None."""
    n = int(w.size)
    itemsize = w.dtype.itemsize
    s = max(8, 32 // itemsize)          # native sublane tile height: f32 8, bf16 16, int8 32
    for c in _COL_CANDIDATES:
        if n % (s * c) == 0:
            return w.reshape(n // (s * c), s, c)
    return None


def _abs_sum_param(w):
    """sum(|w|) in f32, using the Pallas streaming kernel when it pays off."""
    nbytes = int(w.size) * w.dtype.itemsize
    if nbytes < _SMALL_BYTES:
        # Launch/grid-setup overhead dwarfs the HBM stream for tiny tensors.
        return jnp.sum(jnp.abs(w), dtype=jnp.float32)
    v = _grouped_view(w)
    if v is None:
        # TODO(synk): rare ragged-sized large weight (size not divisible by S*128);
        #             the XLA reduction is still a single near-roofline HBM stream.
        return jnp.sum(jnp.abs(w), dtype=jnp.float32)
    return _abs_sum_grouped(v)


@jax.jit
def l1_regularization(params, lam):
    """lam * sum_i sum(|w_i|) over parameters whose name contains 'weight'."""
    total = jnp.float32(0.0)
    for name in sorted(params.keys()):          # static pytree keys
        if "weight" in name:
            total = total + _abs_sum_param(params[name])
    return jnp.float32(lam) * total


class NetworkBaseJAX:
    """JAX/Pallas analogue of NetworkBase: holds params, computes L1 via Pallas."""

    def __init__(self, params: dict, lam: float):
        self.params = params          # dict name -> array (traced on every L1 call)
        self.lam = float(lam)

    def L1(self) -> jax.Array:
        # params / lam are passed as traced jit arguments -> no stale constants,
        # no recompile when parameter values change.
        return l1_regularization(self.params, jnp.float32(self.lam))

    def forward(self):
        raise NotImplementedError("Model must implement forward pass.")

    # TODO(synk): save()/load()/plot_loss_history()/get_loss() are I/O, plotting and
    #             attribute-dispatch utilities with no Pallas equivalent.


if __name__ == "__main__":
    key = jax.random.PRNGKey(0)
    ks = jax.random.split(key, 8)

    # Deterministic parameter set.  Only '*weight*' entries participate in L1, matching
    # NetworkBase.L1()'s named_parameters() name filter.  The two larger weights take
    # the Pallas streaming path (one f32, one bf16); the tiny ones take the XLA path.
    params = {
        "fc1.weight":   jax.random.normal(ks[0], (32, 16), dtype=jnp.float32),
        "fc1.bias":     jax.random.normal(ks[1], (32,),    dtype=jnp.float32),
        "fc2.weight":   jax.random.normal(ks[2], (8, 32),  dtype=jnp.float32),
        "fc2.bias":     jax.random.normal(ks[3], (8,),     dtype=jnp.float32),
        "norm.weight":  jax.random.normal(ks[4], (48,),    dtype=jnp.float32),
        "embed.weight": jax.random.normal(ks[5], (384, 512), dtype=jnp.float32),
        "proj.weight":  jax.random.normal(ks[6], (256, 768), dtype=jnp.float32
                                          ).astype(jnp.bfloat16),
    }
    lam = 1e-3

    model = NetworkBaseJAX(params, lam)
    l1_pallas = jax.block_until_ready(model.L1())

    # Pure-JAX reference.
    ref_total = jnp.float32(0.0)
    for name, p in params.items():
        if "weight" in name:
            ref_total = ref_total + jnp.sum(jnp.abs(p.astype(jnp.float32)))
    ref = jnp.float32(lam) * ref_total
    assert jnp.allclose(l1_pallas, ref, rtol=5e-4, atol=1e-5), (l1_pallas, ref)

    # Exercise the tiled + core-split + ragged-last-tile + clamped-overflow path at a
    # small shape by forcing tiny tiles (G=13, g_block=2 -> 7 blocks, split across 2).
    w_a = jax.random.normal(ks[7], (13, 8, 128), dtype=jnp.float32)
    got_a = jax.block_until_ready(
        jax.jit(lambda w: _abs_sum_grouped(w, g_block=2, force_core_split=2))(w_a))
    want_a = jnp.sum(jnp.abs(w_a))
    assert jnp.allclose(got_a, want_a, rtol=1e-4, atol=1e-3), (got_a, want_a)

    # Same for a bf16 view (S=16 sublane packing), with a partial last tile.
    w_b = jax.random.normal(jax.random.PRNGKey(1), (10, 16, 128),
                            dtype=jnp.float32).astype(jnp.bfloat16)
    got_b = jax.block_until_ready(
        jax.jit(lambda w: _abs_sum_grouped(w, g_block=3, force_core_split=2))(w_b))
    want_b = jnp.sum(jnp.abs(w_b.astype(jnp.float32)))
    assert jnp.allclose(got_b, want_b, rtol=1e-3, atol=1e-2), (got_b, want_b)

    print("KERNEL_OK")
</pallas_src>

<mosaic_0001>
module attributes {stable_mosaic.version = 11 : i64} {
  func.func @_abs_sum_kernel(%arg0: i32, %arg1: i32, %arg2: memref<24x8x1024xf32, #tpu.memory_space<vmem>>, %arg3: memref<1x1xf32, #tpu.memory_space<smem>>, %arg4: memref<8x1024xf32, #tpu.memory_space<vmem>>) attributes {dimension_semantics = [#tpu.dimension_semantics<parallel>, #tpu.dimension_semantics<arbitrary>], iteration_bounds = array<i64: 1, 1>, scalar_prefetch = 0 : i64, scratch_operands = 1 : i64, tpu.core_type = #tpu.core_type<tc>, window_params = [{transform_indices = @transform_0, window_bounds = array<i64: 24, 8, 1024>}, {transform_indices = @transform_1, window_bounds = array<i64: 1, 1>}]} {
    %c0_i32 = arith.constant 0 : i32
    %0 = arith.cmpi eq, %arg1, %c0_i32 : i32
    %1 = arith.extui %0 : i1 to i32
    %c0_i32_0 = arith.constant 0 : i32
    %2 = arith.cmpi ne, %1, %c0_i32_0 : i32
    scf.if %2 {
      %cst = arith.constant 0.000000e+00 : f32
      %16 = vector.broadcast %cst : f32 to vector<8x1024xf32>
      %c0 = arith.constant 0 : index
      %c0_8 = arith.constant 0 : index
      %17 = vector.load %arg4[%c0, %c0_8] : memref<8x1024xf32, #tpu.memory_space<vmem>>, vector<8x1024xf32>
      tpu.vector_store %arg4[%c0, %c0_8], %16 {strides = array<i32>} : memref<8x1024xf32, #tpu.memory_space<vmem>>, vector<8x1024xf32>,
    } else {
    }
    %c1_i32 = arith.constant 1 : i32
    %3 = arith.muli %arg0, %c1_i32 : i32
    %4 = arith.addi %3, %arg1 : i32
    %c24_i32 = arith.constant 24 : i32
    %5 = arith.muli %4, %c24_i32 : i32
    %c24_i32_1 = arith.constant 24 : i32
    %6 = arith.subi %c24_i32_1, %5 : i32
    %c24_i32_2 = arith.constant 24 : i32
    %7 = arith.cmpi sge, %6, %c24_i32_2 : i32
    %8 = arith.extui %7 : i1 to i32
    %c0_i32_3 = arith.constant 0 : i32
    %9 = arith.cmpi ne, %8, %c0_i32_3 : i32
    scf.if %9 {
      %c0 = arith.constant 0 : index
      %c0_8 = arith.constant 0 : index
      %c0_9 = arith.constant 0 : index
      %16 = vector.load %arg2[%c0, %c0_8, %c0_9] : memref<24x8x1024xf32, #tpu.memory_space<vmem>>, vector<24x8x1024xf32>
      %17 = math.absf %16 : vector<24x8x1024xf32>
      %c0_10 = arith.constant 0 : index
      %c0_11 = arith.constant 0 : index
      %18 = vector.load %arg4[%c0_10, %c0_11] : memref<8x1024xf32, #tpu.memory_space<vmem>>, vector<8x1024xf32>
      %cst = arith.constant dense<0.000000e+00> : vector<8x1024xf32>
      %19 = vector.multi_reduction <add>, %17, %cst [0] : vector<24x8x1024xf32> to vector<8x1024xf32>
      %20 = arith.addf %18, %19 : vector<8x1024xf32>
      %c0_12 = arith.constant 0 : index
      %c0_13 = arith.constant 0 : index
      %21 = vector.load %arg4[%c0_12, %c0_13] : memref<8x1024xf32, #tpu.memory_space<vmem>>, vector<8x1024xf32>
      tpu.vector_store %arg4[%c0_12, %c0_13], %20 {strides = array<i32>} : memref<8x1024xf32, #tpu.memory_space<vmem>>, vector<8x1024xf32>,
    } else {
    }
    %c24_i32_4 = arith.constant 24 : i32
    %10 = arith.cmpi slt, %6, %c24_i32_4 : i32
    %11 = arith.extui %10 : i1 to i32
    %c0_i32_5 = arith.constant 0 : i32
    %12 = arith.cmpi ne, %11, %c0_i32_5 : i32
    scf.if %12 {
      %c0_i32_8 = arith.constant 0 : i32
      %16 = arith.maxsi %6, %c0_i32_8 : i32
      %c0_i32_9 = arith.constant 0 : i32
      %c0_i32_10 = arith.constant 0 : i32
      %17 = arith.subi %16, %c0_i32_10 : i32
      %18 = arith.addi %c0_i32_10, %17 : i32
      %c1_i32_11 = arith.constant 1 : i32
      scf.for %arg5 = %c0_i32_10 to %18 step %c1_i32_11  : i32 {
        %c0 = arith.constant 0 : index
        %c0_12 = arith.constant 0 : index
        %19 = vector.load %arg4[%c0, %c0_12] : memref<8x1024xf32, #tpu.memory_space<vmem>>, vector<8x1024xf32>
        %20 = arith.index_cast %arg5 : i32 to index
        %c0_13 = arith.constant 0 : index
        %c0_14 = arith.constant 0 : index
        %21 = vector.load %arg2[%20, %c0_13, %c0_14] : memref<24x8x1024xf32, #tpu.memory_space<vmem>>, vector<1x8x1024xf32>
        %22 = vector.shape_cast %21 : vector<1x8x1024xf32> to vector<8x1024xf32>
        %23 = math.absf %22 : vector<8x1024xf32>
        %24 = arith.addf %19, %23 : vector<8x1024xf32>
        %c0_15 = arith.constant 0 : index
        %c0_16 = arith.constant 0 : index
        %25 = vector.load %arg4[%c0_15, %c0_16] : memref<8x1024xf32, #tpu.memory_space<vmem>>, vector<8x1024xf32>
        tpu.vector_store %arg4[%c0_15, %c0_16], %24 {strides = array<i32>} : memref<8x1024xf32, #tpu.memory_space<vmem>>, vector<8x1024xf32>,
      }
    } else {
    }
    %c0_i32_6 = arith.constant 0 : i32
    %13 = arith.cmpi eq, %arg1, %c0_i32_6 : i32
    %14 = arith.extui %13 : i1 to i32
    %c0_i32_7 = arith.constant 0 : i32
    %15 = arith.cmpi ne, %14, %c0_i32_7 : i32
    scf.if %15 {
      %c0 = arith.constant 0 : index
      %c0_8 = arith.constant 0 : index
      %16 = vector.load %arg4[%c0, %c0_8] : memref<8x1024xf32, #tpu.memory_space<vmem>>, vector<8x1024xf32>
      %17 = vector.shape_cast %16 : vector<8x1024xf32> to vector<1x8x1024xf32>
      %cst = arith.constant dense<0.000000e+00> : vector<1xf32>
      %18 = vector.multi_reduction <add>, %17, %cst [1, 2] : vector<1x8x1024xf32> to vector<1xf32>
      %19 = vector.shape_cast %18 : vector<1xf32> to vector<1x1x1xf32>
      %20 = vector.extract %19[0, 0, 0] : f32 from vector<1x1x1xf32>
      %c0_9 = arith.constant 0 : index
      %c0_10 = arith.constant 0 : index
      %21 = memref.load %arg3[%c0_9, %c0_10] : memref<1x1xf32, #tpu.memory_space<smem>>
      memref.store %20, %arg3[%c0_9, %c0_10] : memref<1x1xf32, #tpu.memory_space<smem>>
    } else {
    }
    return
  }
  func.func @transform_0(%arg0: i32, %arg1: i32) -> (i32, i32, i32) {
    %c1_i32 = arith.constant 1 : i32
    %0 = arith.muli %arg0, %c1_i32 : i32
    %1 = arith.addi %0, %arg1 : i32
    %c0_i32 = arith.constant 0 : i32
    %2 = arith.minsi %1, %c0_i32 : i32
    %c0_i32_0 = arith.constant 0 : i32
    %c0_i32_1 = arith.constant 0 : i32
    %c0_i32_2 = arith.constant 0 : i32
    return %2, %c0_i32_0, %c0_i32_1 : i32, i32, i32
  }
  func.func @transform_1(%arg0: i32, %arg1: i32) -> (i32, i32) {
    %c0_i32 = arith.constant 0 : i32
    %c0_i32_0 = arith.constant 0 : i32
    return %arg0, %c0_i32 : i32, i32
  }
}

module attributes {stable_mosaic.version = 11 : i64} {
  func.func @_abs_sum_kernel(%arg0: i32, %arg1: i32, %arg2: memref<12x16x1024xbf16, #tpu.memory_space<vmem>>, %arg3: memref<1x1xf32, #tpu.memory_space<smem>>, %arg4: memref<16x1024xf32, #tpu.memory_space<vmem>>) attributes {dimension_semantics = [#tpu.dimension_semantics<parallel>, #tpu.dimension_semantics<arbitrary>], iteration_bounds = array<i64: 1, 1>, scalar_prefetch = 0 : i64, scratch_operands = 1 : i64, tpu.core_type = #tpu.core_type<tc>, window_params = [{transform_indices = @transform_0, window_bounds = array<i64: 12, 16, 1024>}, {transform_indices = @transform_1, window_bounds = array<i64: 1, 1>}]} {
    %c0_i32 = arith.constant 0 : i32
    %0 = arith.cmpi eq, %arg1, %c0_i32 : i32
    %1 = arith.extui %0 : i1 to i32
    %c0_i32_0 = arith.constant 0 : i32
    %2 = arith.cmpi ne, %1, %c0_i32_0 : i32
    scf.if %2 {
      %cst = arith.constant 0.000000e+00 : f32
      %16 = vector.broadcast %cst : f32 to vector<16x1024xf32>
      %c0 = arith.constant 0 : index
      %c0_8 = arith.constant 0 : index
      %17 = vector.load %arg4[%c0, %c0_8] : memref<16x1024xf32, #tpu.memory_space<vmem>>, vector<16x1024xf32>
      tpu.vector_store %arg4[%c0, %c0_8], %16 {strides = array<i32>} : memref<16x1024xf32, #tpu.memory_space<vmem>>, vector<16x1024xf32>,
    } else {
    }
    %c1_i32 = arith.constant 1 : i32
    %3 = arith.muli %arg0, %c1_i32 : i32
    %4 = arith.addi %3, %arg1 : i32
    %c12_i32 = arith.constant 12 : i32
    %5 = arith.muli %4, %c12_i32 : i32
    %c12_i32_1 = arith.constant 12 : i32
    %6 = arith.subi %c12_i32_1, %5 : i32
    %c12_i32_2 = arith.constant 12 : i32
    %7 = arith.cmpi sge, %6, %c12_i32_2 : i32
    %8 = arith.extui %7 : i1 to i32
    %c0_i32_3 = arith.constant 0 : i32
    %9 = arith.cmpi ne, %8, %c0_i32_3 : i32
    scf.if %9 {
      %c0 = arith.constant 0 : index
      %c0_8 = arith.constant 0 : index
      %c0_9 = arith.constant 0 : index
      %16 = vector.load %arg2[%c0, %c0_8, %c0_9] : memref<12x16x1024xbf16, #tpu.memory_space<vmem>>, vector<12x16x1024xbf16>
      %17 = math.absf %16 : vector<12x16x1024xbf16>
      %18 = arith.extf %17 : vector<12x16x1024xbf16> to vector<12x16x1024xf32>
      %c0_10 = arith.constant 0 : index
      %c0_11 = arith.constant 0 : index
      %19 = vector.load %arg4[%c0_10, %c0_11] : memref<16x1024xf32, #tpu.memory_space<vmem>>, vector<16x1024xf32>
      %cst = arith.constant dense<0.000000e+00> : vector<16x1024xf32>
      %20 = vector.multi_reduction <add>, %18, %cst [0] : vector<12x16x1024xf32> to vector<16x1024xf32>
      %21 = arith.addf %19, %20 : vector<16x1024xf32>
      %c0_12 = arith.constant 0 : index
      %c0_13 = arith.constant 0 : index
      %22 = vector.load %arg4[%c0_12, %c0_13] : memref<16x1024xf32, #tpu.memory_space<vmem>>, vector<16x1024xf32>
      tpu.vector_store %arg4[%c0_12, %c0_13], %21 {strides = array<i32>} : memref<16x1024xf32, #tpu.memory_space<vmem>>, vector<16x1024xf32>,
    } else {
    }
    %c12_i32_4 = arith.constant 12 : i32
    %10 = arith.cmpi slt, %6, %c12_i32_4 : i32
    %11 = arith.extui %10 : i1 to i32
    %c0_i32_5 = arith.constant 0 : i32
    %12 = arith.cmpi ne, %11, %c0_i32_5 : i32
    scf.if %12 {
      %c0_i32_8 = arith.constant 0 : i32
      %16 = arith.maxsi %6, %c0_i32_8 : i32
      %c0_i32_9 = arith.constant 0 : i32
      %c0_i32_10 = arith.constant 0 : i32
      %17 = arith.subi %16, %c0_i32_10 : i32
      %18 = arith.addi %c0_i32_10, %17 : i32
      %c1_i32_11 = arith.constant 1 : i32
      scf.for %arg5 = %c0_i32_10 to %18 step %c1_i32_11  : i32 {
        %c0 = arith.constant 0 : index
        %c0_12 = arith.constant 0 : index
        %19 = vector.load %arg4[%c0, %c0_12] : memref<16x1024xf32, #tpu.memory_space<vmem>>, vector<16x1024xf32>
        %20 = arith.index_cast %arg5 : i32 to index
        %c0_13 = arith.constant 0 : index
        %c0_14 = arith.constant 0 : index
        %21 = vector.load %arg2[%20, %c0_13, %c0_14] : memref<12x16x1024xbf16, #tpu.memory_space<vmem>>, vector<1x16x1024xbf16>
        %22 = vector.shape_cast %21 : vector<1x16x1024xbf16> to vector<16x1024xbf16>
        %23 = math.absf %22 : vector<16x1024xbf16>
        %24 = arith.extf %23 : vector<16x1024xbf16> to vector<16x1024xf32>
        %25 = arith.addf %19, %24 : vector<16x1024xf32>
        %c0_15 = arith.constant 0 : index
        %c0_16 = arith.constant 0 : index
        %26 = vector.load %arg4[%c0_15, %c0_16] : memref<16x1024xf32, #tpu.memory_space<vmem>>, vector<16x1024xf32>
        tpu.vector_store %arg4[%c0_15, %c0_16], %25 {strides = array<i32>} : memref<16x1024xf32, #tpu.memory_space<vmem>>, vector<16x1024xf32>,
      }
    } else {
    }
    %c0_i32_6 = arith.constant 0 : i32
    %13 = arith.cmpi eq, %arg1, %c0_i32_6 : i32
    %14 = arith.extui %13 : i1 to i32
    %c0_i32_7 = arith.constant 0 : i32
    %15 = arith.cmpi ne, %14, %c0_i32_7 : i32
    scf.if %15 {
      %c0 = arith.constant 0 : index
      %c0_8 = arith.constant 0 : index
      %16 = vector.load %arg4[%c0, %c0_8] : memref<16x1024xf32, #tpu.memory_space<vmem>>, vector<16x1024xf32>
      %17 = vector.shape_cast %16 : vector<16x1024xf32> to vector<1x16x1024xf32>
      %cst = arith.constant dense<0.000000e+00> : vector<1xf32>
      %18 = vector.multi_reduction <add>, %17, %cst [1, 2] : vector<1x16x1024xf32> to vector<1xf32>
      %19 = vector.shape_cast %18 : vector<1xf32> to vector<1x1x1xf32>
      %20 = vector.extract %19[0, 0, 0] : f32 from vector<1x1x1xf32>
      %c0_9 = arith.constant 0 : index
      %c0_10 = arith.constant 0 : index
      %21 = memref.load %arg3[%c0_9, %c0_10] : memref<1x1xf32, #tpu.memory_space<smem>>
      memref.store %20, %arg3[%c0_9, %c0_10] : memref<1x1xf32, #tpu.memory_space<smem>>
    } else {
    }
    return
  }
  func.func @transform_0(%arg0: i32, %arg1: i32) -> (i32, i32, i32) {
    %c1_i32 = arith.constant 1 : i32
    %0 = arith.muli %arg0, %c1_i32 : i32
    %1 = arith.addi %0, %arg1 : i32
    %c0_i32 = arith.constant 0 : i32
    %2 = arith.minsi %1, %c0_i32 : i32
    %c0_i32_0 = arith.constant 0 : i32
    %c0_i32_1 = arith.constant 0 : i32
    %c0_i32_2 = arith.constant 0 : i32
    return %2, %c0_i32_0, %c0_i32_1 : i32, i32, i32
  }
  func.func @transform_1(%arg0: i32, %arg1: i32) -> (i32, i32) {
    %c0_i32 = arith.constant 0 : i32
    %c0_i32_0 = arith.constant 0 : i32
    return %arg0, %c0_i32 : i32, i32
  }
}

</mosaic_0001>

<bundles_post_ra>
// kernel: l1_regularization.3
= control target key start
LH: loop header
LB: loop body
LE: loop exit
PB: predicated region body
PF: predicated region fallthrough
CT: control target
= control target key end

     0   :  { %6 = vsyncpa [#allocation4], 0  ;;  %s2072_s0 = inlined_call_operand.vmem [shape: bf16[12,16,1024], index: 0, kind: input, shape index: {}]   ;;  %s2073_s1 = inlined_call_operand.hbm [shape: f32[1,1], index: 1, kind: output, shape index: {}]  }
   0x1   :  { %v71_v0 = vld [vmem:[%s2072_s0] sm:$0xff]  ;;  %v72_v1 = vld [vmem:[%s2072_s0 + $0x8] sm:$0xff]  ;;  %v73_v2 = vld [vmem:[%s2072_s0 + $0x10] sm:$0xff]  ;;  %s851_s26 = scalar_lea.hbm %s2073_s1, 16 }
   0x2   :  { %v74_v3 = vld [vmem:[%s2072_s0 + $0x18] sm:$0xff]  ;;  %v75_v4 = vld [vmem:[%s2072_s0 + $0x20] sm:$0xff]  ;;  %v167_v5 = vand.u32 2147450879, %v71_v0  ;;  %v76_v6 = vld [vmem:[%s2072_s0 + $0x28] sm:$0xff]  ;;  %p852_p0 = scmp.ne.s32.totalorder %s2073_s1, %s851_s26  ;;  %p855_p1 = scmp.lt.u32.totalorder %s851_s26, %s2073_s1 }
   0x3   :  { %v79_v7 = vld [vmem:[%s2072_s0 + $0x40] sm:$0xff]  ;;  %v168_v8 = vand.u32 2147450879, %v72_v1  ;;  %v77_v9 = vld [vmem:[%s2072_s0 + $0x30] sm:$0xff]  ;;  %v169_v10 = vand.u32 2147450879, %v73_v2 }
   0x4   :  { %v78_v11 = vld [vmem:[%s2072_s0 + $0x38] sm:$0xff]  ;;  %v80_v12 = vld [vmem:[%s2072_s0 + $0x48] sm:$0xff]  ;;  %v170_v13 = vand.u32 2147450879, %v74_v3  ;;  %v171_v14 = vand.u32 2147450879, %v75_v4  ;;  %v263_v18 = vunpack.c.l.bf16 %v167_v5  ;;  %v264_v21 = vunpack.c.h.bf16 %v167_v5  ;;  %p857_p2 = pnand %p855_p1, %p852_p0 }
   0x5   :  { %v81_v15 = vld [vmem:[%s2072_s0 + $0x50] sm:$0xff]  ;;  %v172_v16 = vand.u32 2147450879, %v76_v6  ;;  %v175_v17 = vand.u32 2147450879, %v79_v7  ;;  %v82_v19 = vld [vmem:[%s2072_s0 + $0x58] sm:$0xff]  ;;  %v265_v22 = vunpack.c.l.bf16 %v168_v8  ;;  %v266_v23 = vunpack.c.h.bf16 %v168_v8 }
   0x6   :  { %v173_v20 = vand.u32 2147450879, %v77_v9  ;;  %v83_v24 = vld [vmem:[%s2072_s0 + $0x60] sm:$0xff]  ;;  %v174_v25 = vand.u32 2147450879, %v78_v11  ;;  %v267_v27 = vunpack.c.l.bf16 %v169_v10  ;;  %v268_v28 = vunpack.c.h.bf16 %v169_v10  ;;  %v84_v29 = vld [vmem:[%s2072_s0 + $0x68] sm:$0xff] }
   0x7   :  { %v176_v26 = vand.u32 2147450879, %v80_v12  ;;  %v177_v30 = vand.u32 2147450879, %v81_v15  ;;  %v269_v31 = vunpack.c.l.bf16 %v170_v13  ;;  %v270_v32 = vunpack.c.h.bf16 %v170_v13  ;;  %v85_v34 = vld [vmem:[%s2072_s0 + $0x70] sm:$0xff]  ;;  %v87_v39 = vld [vmem:[%s2072_s0 + $0x80] sm:$0xff] }
   0x8   :  { %v916_v33 = vunpack.c.l.bf16 %v171_v14  ;;  %v178_v35 = vand.u32 2147450879, %v82_v19  ;;  %v921_v36 = vunpack.c.h.bf16 %v171_v14  ;;  %v923_v37 = vunpack.c.l.bf16 %v172_v16  ;;  %v86_v44 = vld [vmem:[%s2072_s0 + $0x78] sm:$0xff]  ;;  %v88_v49 = vld [vmem:[%s2072_s0 + $0x88] sm:$0xff]  ;;  %v89_v54 = vld [vmem:[%s2072_s0 + $0x90] sm:$0xff] }
   0x9   :  { %v279_v38 = vunpack.c.l.bf16 %v175_v17  ;;  %v179_v40 = vand.u32 2147450879, %v83_v24  ;;  %v928_v41 = vunpack.c.h.bf16 %v172_v16  ;;  %v930_v42 = vunpack.c.l.bf16 %v173_v20  ;;  %v90_v59 = vld [vmem:[%s2072_s0 + $0x98] sm:$0xff]  ;;  %v91_v0 = vld [vmem:[%s2072_s0 + $0xa0] sm:$0xff]  ;;  %v92_v5 = vld [vmem:[%s2072_s0 + $0xa8] sm:$0xff] }
   0xa   :  { %2102 = vst [vmem:[#allocation6_spill] sm:$0xff] %v916_v33  ;;  %2103 = vst [vmem:[#allocation7_spill] sm:$0xff] %v921_v36  ;;  %v280_v43 = vunpack.c.h.bf16 %v175_v17  ;;  %v180_v45 = vand.u32 2147450879, %v84_v29  ;;  %v935_v46 = vunpack.c.h.bf16 %v173_v20  ;;  %v937_v47 = vunpack.c.l.bf16 %v174_v25  ;;  %v93_v10 = vld [vmem:[%s2072_s0 + $0xb0] sm:$0xff]  ;;  %v95_v15 = vld [vmem:[%s2072_s0 + $0xc0] sm:$0xff] }
   0xb   :  { %2104 = vst [vmem:[#allocation8_spill] sm:$0xff] %v923_v37  ;;  %2105 = vst [vmem:[#allocation9_spill] sm:$0xff] %v928_v41  ;;  %v281_v48 = vunpack.c.l.bf16 %v176_v26  ;;  %v181_v50 = vand.u32 2147450879, %v85_v34  ;;  %v942_v51 = vunpack.c.h.bf16 %v174_v25  ;;  %v282_v52 = vunpack.c.h.bf16 %v176_v26  ;;  %v94_v20 = vld [vmem:[%s2072_s0 + $0xb8] sm:$0xff]  ;;  %v96_v25 = vld [vmem:[%s2072_s0 + $0xc8] sm:$0xff] }
   0xc   :  { %2106 = vst [vmem:[#allocation10_spill] sm:$0xff] %v930_v42  ;;  %2107 = vst [vmem:[#allocation11_spill] sm:$0xff] %v935_v46  ;;  %v283_v53 = vunpack.c.l.bf16 %v177_v30  ;;  %v183_v55 = vand.u32 2147450879, %v87_v39  ;;  %v284_v56 = vunpack.c.h.bf16 %v177_v30  ;;  %v285_v57 = vunpack.c.l.bf16 %v178_v35  ;;  %v97_v34 = vld [vmem:[%s2072_s0 + $0xd0] sm:$0xff]  ;;  %v1244_v46 = vld [vmem:[%s2072_s0 + $0x200] sm:$0xff] }
   0xd   :  { %2108 = vst [vmem:[#allocation12_spill] sm:$0xff] %v937_v47  ;;  %2109 = vst [vmem:[#allocation13_spill] sm:$0xff] %v942_v51  ;;  %v471_v58 = vadd.f32 %v279_v38, %v263_v18  ;;  %v182_v60 = vand.u32 2147450879, %v86_v44  ;;  %v286_v61 = vunpack.c.h.bf16 %v178_v35  ;;  %v950_v62 = vunpack.c.l.bf16 %v179_v40  ;;  %v1224_v47 = vld [vmem:[%s2072_s0 + $0x1e8] sm:$0xff]  ;;  %v1259_v42 = vld [vmem:[%s2072_s0 + $0x210] sm:$0xff] }
   0xe   :  { %v482_v63 = vadd.f32 %v280_v43, %v264_v21  ;;  %v184_v1 = vand.u32 2147450879, %v88_v49  ;;  %v955_v2 = vunpack.c.h.bf16 %v179_v40  ;;  %v957_v3 = vunpack.c.l.bf16 %v180_v45  ;;  %v1299_v37 = vld [vmem:[%s2072_s0 + $0x240] sm:$0xff]  ;;  %v1321_v33 = vld [vmem:[%s2072_s0 + $0x258] sm:$0xff] }
   0xf   :  { %2110 = vst [vmem:[#allocation14_spill] sm:$0xff] %v950_v62  ;;  %v493_v4 = vadd.f32 %v281_v48, %v265_v22  ;;  %v185_v6 = vand.u32 2147450879, %v89_v54  ;;  %v962_v7 = vunpack.c.h.bf16 %v180_v45  ;;  %v964_v8 = vunpack.c.l.bf16 %v181_v50  ;;  %2149 = vst [vmem:[#allocation53_spill] sm:$0xff] %v1299_v37 }
  0x10   :  { %2111 = vst [vmem:[#allocation15_spill] sm:$0xff] %v955_v2  ;;  %2112 = vst [vmem:[#allocation16_spill] sm:$0xff] %v957_v3  ;;  %v504_v9 = vadd.f32 %v282_v52, %v266_v23  ;;  %v186_v11 = vand.u32 2147450879, %v90_v59  ;;  %v969_v12 = vunpack.c.h.bf16 %v181_v50  ;;  %v295_v13 = vunpack.c.l.bf16 %v183_v55  ;;  %v1304_v2 = vld [vmem:[%s2072_s0 + $0x248] sm:$0xff] }
  0x11   :  { %2113 = vst [vmem:[#allocation17_spill] sm:$0xff] %v962_v7  ;;  %2114 = vst [vmem:[#allocation18_spill] sm:$0xff] %v964_v8  ;;  %v515_v14 = vadd.f32 %v283_v53, %v267_v27  ;;  %v187_v16 = vand.u32 2147450879, %v91_v0  ;;  %v974_v17 = vunpack.c.l.bf16 %v182_v60  ;;  %v976_v18 = vunpack.c.h.bf16 %v182_v60  ;;  %v100_v53 = vld [vmem:[%s2072_s0 + $0xe8] sm:$0xff]  ;;  %v1018_v0 = vld [vmem:[%s2072_s0 + $0xf8] sm:$0xff] }
  0x12   :  { %2115 = vst [vmem:[#allocation19_spill] sm:$0xff] %v969_v12  ;;  %v296_v19 = vunpack.c.h.bf16 %v183_v55  ;;  %v188_v21 = vand.u32 2147450879, %v92_v5  ;;  %v297_v22 = vunpack.c.l.bf16 %v184_v1  ;;  %v526_v23 = vadd.f32 %v284_v56, %v268_v28  ;;  %v98_v28 = vld [vmem:[%s2072_s0 + $0xd8] sm:$0xff]  ;;  %2150 = vst [vmem:[#allocation54_spill] sm:$0xff] %v1304_v2  ;;  %v1458_v2 = vld [vmem:[%s2072_s0 + $0x2f0] sm:$0xff] }
  0x13   :  { %2116 = vst [vmem:[#allocation20_spill] sm:$0xff] %v974_v17  ;;  %2117 = vst [vmem:[#allocation21_spill] sm:$0xff] %v976_v18  ;;  %v537_v24 = vadd.f32 %v285_v57, %v269_v31  ;;  %v189_v26 = vand.u32 2147450879, %v93_v10  ;;  %v298_v27 = vunpack.c.h.bf16 %v184_v1  ;;  %v299_v29 = vunpack.c.l.bf16 %v185_v6  ;;  %v1023_v1 = vld [vmem:[%s2072_s0 + $0x100] sm:$0xff]  ;;  %v1032_v10 = vld [vmem:[%s2072_s0 + $0x108] sm:$0xff] }
  0x14   :  { %v548_v30 = vadd.f32 %v286_v61, %v270_v32  ;;  %v191_v35 = vand.u32 2147450879, %v95_v15  ;;  %v300_v38 = vunpack.c.h.bf16 %v185_v6  ;;  %v301_v39 = vunpack.c.l.bf16 %v186_v11  ;;  %v99_v32 = vld [vmem:[%s2072_s0 + $0xe0] sm:$0xff]  ;;  %v1204_v18 = vld [vmem:[%s2072_s0 + $0x1d0] sm:$0xff]  ;;  %v1239_v12 = vld [vmem:[%s2072_s0 + $0x1f8] sm:$0xff]  ;;  %2154 = vst [vmem:[#allocation57_spill] sm:$0xff] %v1321_v33 }
  0x15   :  { %v472_v40 = vadd.f32 %v471_v58, %v295_v13  ;;  %v190_v31 = vand.u32 2147450879, %v94_v20  ;;  %v302_v43 = vunpack.c.h.bf16 %v186_v11  ;;  %v990_v44 = vunpack.c.l.bf16 %v187_v16  ;;  %v101_v58 = vld [vmem:[%s2072_s0 + $0xf0] sm:$0xff]  ;;  %v1042_v13 = vld [vmem:[%s2072_s0 + $0x118] sm:$0xff]  ;;  %v1051_v20 = vld [vmem:[%s2072_s0 + $0x120] sm:$0xff]  ;;  %2176 = vst [vmem:[#allocation73_spill] sm:$0xff] %v1458_v2 }
  0x16   :  { %v483_v45 = vadd.f32 %v482_v63, %v296_v19  ;;  %v192_v48 = vand.u32 2147450879, %v96_v25  ;;  %v995_v49 = vunpack.c.h.bf16 %v187_v16  ;;  %v997_v50 = vunpack.c.l.bf16 %v188_v21  ;;  %v1037_v11 = vld [vmem:[%s2072_s0 + $0x110] sm:$0xff]  ;;  %v1219_v17 = vld [vmem:[%s2072_s0 + $0x1e0] sm:$0xff]  ;;  %v1264_v7 = vld [vmem:[%s2072_s0 + $0x218] sm:$0xff] }
  0x17   :  { %2118 = vst [vmem:[#allocation22_spill] sm:$0xff] %v990_v44  ;;  %v494_v52 = vadd.f32 %v493_v4, %v297_v22  ;;  %v193_v54 = vand.u32 2147450879, %v97_v34  ;;  %v1002_v55 = vunpack.c.h.bf16 %v188_v21  ;;  %v1004_v56 = vunpack.c.l.bf16 %v189_v26  ;;  %v1056_v21 = vld [vmem:[%s2072_s0 + $0x128] sm:$0xff]  ;;  %v1061_v22 = vld [vmem:[%s2072_s0 + $0x130] sm:$0xff] }
  0x18   :  { %2119 = vst [vmem:[#allocation23_spill] sm:$0xff] %v995_v49  ;;  %2120 = vst [vmem:[#allocation24_spill] sm:$0xff] %v997_v50  ;;  %v1006_v57 = vadd.f32 %v504_v9, %v298_v27  ;;  %v194_v59 = vand.u32 2147450879, %v98_v28  ;;  %v1011_v60 = vunpack.c.h.bf16 %v189_v26  ;;  %v311_v61 = vunpack.c.l.bf16 %v191_v35  ;;  %v1072_v27 = vld [vmem:[%s2072_s0 + $0x138] sm:$0xff]  ;;  %v1082_v34 = vld [vmem:[%s2072_s0 + $0x148] sm:$0xff] }
  0x19   :  { %2121 = vst [vmem:[#allocation25_spill] sm:$0xff] %v1002_v55  ;;  %2122 = vst [vmem:[#allocation26_spill] sm:$0xff] %v1004_v56  ;;  %v1013_v63 = vadd.f32 %v515_v14, %v299_v29  ;;  %v195_v4 = vand.u32 2147450879, %v99_v32  ;;  %v1025_v5 = vunpack.c.l.bf16 %v190_v31  ;;  %v1027_v6 = vunpack.c.h.bf16 %v190_v31  ;;  %v1077_v29 = vld [vmem:[%s2072_s0 + $0x140] sm:$0xff]  ;;  %v1095_v28 = vld [vmem:[%s2072_s0 + $0x150] sm:$0xff] }
  0x1a   :  { %2123 = vst [vmem:[#allocation27_spill] sm:$0xff] %v1006_v57  ;;  %2124 = vst [vmem:[#allocation28_spill] sm:$0xff] %v1011_v60  ;;  %v312_v9 = vunpack.c.h.bf16 %v191_v35  ;;  %v196_v14 = vand.u32 2147450879, %v100_v53  ;;  %v313_v15 = vunpack.c.l.bf16 %v192_v48  ;;  %v1044_v16 = vadd.f32 %v526_v23, %v300_v38  ;;  %v1100_v31 = vld [vmem:[%s2072_s0 + $0x158] sm:$0xff]  ;;  %v1164_v60 = vld [vmem:[%s2072_s0 + $0x1a0] sm:$0xff] }
  0x1b   :  { %2125 = vst [vmem:[#allocation29_spill] sm:$0xff] %v1013_v63  ;;  %2126 = vst [vmem:[#allocation30_spill] sm:$0xff] %v1025_v5  ;;  %v1046_v19 = vadd.f32 %v537_v24, %v301_v39  ;;  %v197_v25 = vand.u32 2147450879, %v101_v58  ;;  %v1063_v23 = vunpack.c.h.bf16 %v192_v48  ;;  %v1065_v24 = vunpack.c.l.bf16 %v193_v54  ;;  %v1122_v58 = vld [vmem:[%s2072_s0 + $0x170] sm:$0xff]  ;;  %v1279_v50 = vld [vmem:[%s2072_s0 + $0x228] sm:$0xff] }
  0x1c   :  { %2127 = vst [vmem:[#allocation31_spill] sm:$0xff] %v1027_v6  ;;  %2128 = vst [vmem:[#allocation32_spill] sm:$0xff] %v1044_v16  ;;  %v1067_v26 = vadd.f32 %v548_v30, %v302_v43  ;;  %v1084_v35 = vunpack.c.h.bf16 %v193_v54  ;;  %v1086_v38 = vunpack.c.l.bf16 %v194_v59  ;;  %v1088_v30 = vunpack.c.h.bf16 %v194_v59  ;;  %v1105_v43 = vld [vmem:[%s2072_s0 + $0x160] sm:$0xff]  ;;  %v1117_v54 = vld [vmem:[%s2072_s0 + $0x168] sm:$0xff] }
  0x1d   :  { %2129 = vst [vmem:[#allocation33_spill] sm:$0xff] %v1046_v19  ;;  %2130 = vst [vmem:[#allocation34_spill] sm:$0xff] %v1063_v23  ;;  %v1090_v39 = vadd.f32 %v472_v40, %v311_v61  ;;  %v198_v32 = vand.u32 2147450879, %v1018_v0  ;;  %v1108_v48 = vunpack.c.l.bf16 %v195_v4  ;;  %v1110_v40 = vunpack.c.h.bf16 %v195_v4  ;;  %v1127_v59 = vld [vmem:[%s2072_s0 + $0x178] sm:$0xff]  ;;  %v1144_v6 = vld [vmem:[%s2072_s0 + $0x188] sm:$0xff] }
  0x1e   :  { %2131 = vst [vmem:[#allocation35_spill] sm:$0xff] %v1065_v24  ;;  %2132 = vst [vmem:[#allocation36_spill] sm:$0xff] %v1067_v26  ;;  %v1112_v53 = vadd.f32 %v483_v45, %v312_v9  ;;  %v199_v61 = vand.u32 2147450879, %v1023_v1  ;;  %v1130_v0 = vunpack.c.l.bf16 %v196_v14  ;;  %v1132_v45 = vunpack.c.h.bf16 %v196_v14  ;;  %v1139_v9 = vld [vmem:[%s2072_s0 + $0x180] sm:$0xff]  ;;  %v1149_v1 = vld [vmem:[%s2072_s0 + $0x190] sm:$0xff] }
  0x1f   :  { %2133 = vst [vmem:[#allocation37_spill] sm:$0xff] %v1084_v35  ;;  %2134 = vst [vmem:[#allocation38_spill] sm:$0xff] %v1086_v38  ;;  %v1134_v4 = vadd.f32 %v494_v52, %v313_v15  ;;  %v200_v14 = vand.u32 2147450879, %v1032_v10  ;;  %v1154_v5 = vunpack.c.l.bf16 %v197_v25  ;;  %v1169_v10 = vld [vmem:[%s2072_s0 + $0x1a8] sm:$0xff]  ;;  %v1174_v56 = vunpack.c.h.bf16 %v197_v25  ;;  %v1179_v55 = vld [vmem:[%s2072_s0 + $0x1b0] sm:$0xff] }
  0x20   :  { %2135 = vst [vmem:[#allocation39_spill] sm:$0xff] %v1088_v30  ;;  %2136 = vst [vmem:[#allocation40_spill] sm:$0xff] %v1108_v48  ;;  %v1189_v52 = vld [vmem:[%s2072_s0 + $0x1c0] sm:$0xff]  ;;  %v1209_v15 = vld [vmem:[%s2072_s0 + $0x1d8] sm:$0xff]  ;;  %v1214_v51 = vunpack.c.h.bf16 %v198_v32  ;;  %v1254_v8 = vunpack.c.h.bf16 %v199_v61  ;;  %v2152_v36 = vand.u32 2147450879, %v1037_v11 }
  0x21   :  { %2137 = vst [vmem:[#allocation41_spill] sm:$0xff] %v1110_v40  ;;  %2138 = vst [vmem:[#allocation42_spill] sm:$0xff] %v1112_v53  ;;  %v1199_v40 = vld [vmem:[%s2072_s0 + $0x1c8] sm:$0xff]  ;;  %v1229_v25 = vld [vmem:[%s2072_s0 + $0x1f0] sm:$0xff]  ;;  %v1274_v41 = vunpack.c.l.bf16 %v200_v14  ;;  %v1294_v3 = vunpack.c.h.bf16 %v200_v14  ;;  %v2160_v44 = vand.u32 2147450879, %v1042_v13 }
  0x22   :  { %2139 = vst [vmem:[#allocation43_spill] sm:$0xff] %v1130_v0  ;;  %2140 = vst [vmem:[#allocation44_spill] sm:$0xff] %v1132_v45  ;;  %v1159_v45 = vld [vmem:[%s2072_s0 + $0x198] sm:$0xff]  ;;  %v1284_v49 = vld [vmem:[%s2072_s0 + $0x230] sm:$0xff]  ;;  %v1316_v62 = vunpack.c.l.bf16 %v2152_v36  ;;  %v2166_v11 = vand.u32 2147450879, %v1051_v20 }
  0x23   :  { %2141 = vst [vmem:[#allocation45_spill] sm:$0xff] %v1134_v4  ;;  %2142 = vst [vmem:[#allocation46_spill] sm:$0xff] %v1154_v5  ;;  %v1184_v0 = vld [vmem:[%s2072_s0 + $0x1b8] sm:$0xff]  ;;  %v1249_v5 = vld [vmem:[%s2072_s0 + $0x208] sm:$0xff]  ;;  %v2178_v37 = vand.u32 2147450879, %v1061_v22 }
  0x24   :  { %2143 = vst [vmem:[#allocation47_spill] sm:$0xff] %v1174_v56  ;;  %v1194_v56 = vunpack.c.l.bf16 %v198_v32  ;;  %2145 = vst [vmem:[#allocation49_spill] sm:$0xff] %v1214_v51  ;;  %v1234_v51 = vunpack.c.l.bf16 %v199_v61  ;;  %v1269_v32 = vld [vmem:[%s2072_s0 + $0x220] sm:$0xff]  ;;  %v1309_v61 = vld [vmem:[%s2072_s0 + $0x250] sm:$0xff]  ;;  %v2186_v33 = vand.u32 2147450879, %v1077_v29 }
  0x25   :  { %2146 = vst [vmem:[#allocation50_spill] sm:$0xff] %v1254_v8  ;;  %2147 = vst [vmem:[#allocation51_spill] sm:$0xff] %v1274_v41  ;;  %v1326_v26 = vld [vmem:[%s2072_s0 + $0x260] sm:$0xff]  ;;  %v1331_v14 = vld [vmem:[%s2072_s0 + $0x268] sm:$0xff]  ;;  %v1472_v23 = vunpack.c.l.bf16 %v2178_v37  ;;  %v2192_v29 = vand.u32 2147450879, %v1100_v31 }
  0x26   :  { %2144 = vst [vmem:[#allocation48_spill] sm:$0xff] %v1194_v56  ;;  %v1289_v56 = vld [vmem:[%s2072_s0 + $0x238] sm:$0xff]  ;;  %2148 = vst [vmem:[#allocation52_spill] sm:$0xff] %v1294_v3  ;;  %v1343_v19 = vld [vmem:[%s2072_s0 + $0x270] sm:$0xff]  ;;  %v2200_v31 = vand.u32 2147450879, %v1122_v58 }
  0x27   :  { %2151 = vst [vmem:[#allocation55_spill] sm:$0xff] %v1309_v61  ;;  %2153 = vst [vmem:[#allocation56_spill] sm:$0xff] %v1316_v62  ;;  %v2157_v62 = vmov %v2152_v36  ;;  %v1348_v38 = vld [vmem:[%s2072_s0 + $0x278] sm:$0xff]  ;;  %v1353_v36 = vld [vmem:[%s2072_s0 + $0x280] sm:$0xff]  ;;  %v2193_v2 = vmov %v2192_v29  ;;  %v2210_v58 = vand.u32 2147450879, %v1144_v6 }
  0x28   :  { %2155 = vst [vmem:[#allocation58_spill] sm:$0xff] %v1326_v26  ;;  %2156 = vst [vmem:[#allocation59_spill] sm:$0xff] %v1331_v14  ;;  %v1338_v30 = vunpack.c.h.bf16 %v2157_v62  ;;  %v1365_v16 = vld [vmem:[%s2072_s0 + $0x288] sm:$0xff]  ;;  %v1370_v35 = vld [vmem:[%s2072_s0 + $0x290] sm:$0xff]  ;;  %v2216_v6 = vand.u32 2147450879, %v1164_v60 }
  0x29   :  { %2159 = vst [vmem:[#allocation61_spill] sm:$0xff] %v1348_v38  ;;  %v1375_v62 = vld [vmem:[%s2072_s0 + $0x298] sm:$0xff]  ;;  %v1387_v63 = vld [vmem:[%s2072_s0 + $0x2a0] sm:$0xff]  ;;  %v1392_v24 = vld [vmem:[%s2072_s0 + $0x2a8] sm:$0xff]  ;;  %v2182_v38 = vand.u32 2147450879, %v1072_v27 }
  0x2a   :  { %2158 = vst [vmem:[#allocation60_spill] sm:$0xff] %v1338_v30  ;;  %v1360_v30 = vunpack.c.l.bf16 %v2160_v44  ;;  %2164 = vst [vmem:[#allocation64_spill] sm:$0xff] %v1392_v24  ;;  %v1409_v4 = vld [vmem:[%s2072_s0 + $0x2b8] sm:$0xff]  ;;  %v1414_v41 = vld [vmem:[%s2072_s0 + $0x2c0] sm:$0xff]  ;;  %v2202_v24 = vmov %v2200_v31  ;;  %v2228_v60 = vand.u32 2147450879, %v1184_v0 }
  0x2b   :  { %2168 = vst [vmem:[#allocation67_spill] sm:$0xff] %v1409_v4  ;;  %v1419_v13 = vld [vmem:[%s2072_s0 + $0x2c8] sm:$0xff]  ;;  %v1431_v8 = vld [vmem:[%s2072_s0 + $0x2d0] sm:$0xff]  ;;  %v1436_v57 = vld [vmem:[%s2072_s0 + $0x2d8] sm:$0xff]  ;;  %v2184_v22 = vmov %v2182_v38  ;;  %v1499_v4 = vunpack.c.l.bf16 %v2186_v33  ;;  %v2236_v0 = vand.u32 2147450879, %v1204_v18 }
  0x2c   :  { %2161 = vst [vmem:[#allocation62_spill] sm:$0xff] %v1360_v30  ;;  %v2162_v30 = vmov %v2160_v44  ;;  %v1397_v44 = vld [vmem:[%s2072_s0 + $0x2b0] sm:$0xff]  ;;  %2171 = vst [vmem:[#allocation69_spill] sm:$0xff] %v1436_v57  ;;  %v1453_v61 = vld [vmem:[%s2072_s0 + $0x2e8] sm:$0xff]  ;;  %v2245_v18 = vand.u32 2147450879, %v1224_v47 }
  0x2d   :  { %v1382_v3 = vunpack.c.h.bf16 %v2162_v30  ;;  %2165 = vst [vmem:[#allocation65_spill] sm:$0xff] %v1397_v44  ;;  %v2173_v30 = vand.u32 2147450879, %v1056_v21  ;;  %2175 = vst [vmem:[#allocation72_spill] sm:$0xff] %v1453_v61  ;;  %v2180_v21 = vmov %v2178_v37  ;;  %v1486_v37 = vunpack.c.l.bf16 %v2182_v38 }
  0x2e   :  { %2179 = vst [vmem:[#allocation74_spill] sm:$0xff] %v1472_v23  ;;  %v2187_v38 = vmov %v2186_v33  ;;  %v2257_v47 = vand.u32 2147450879, %v1244_v46  ;;  %v2264_v46 = vand.u32 2147450879, %v1264_v7 }
  0x2f   :  { %2163 = vst [vmem:[#allocation63_spill] sm:$0xff] %v1382_v3  ;;  %v1404_v3 = vunpack.c.l.bf16 %v2166_v11  ;;  %v2177_v14 = vmov %v2173_v30  ;;  %2183 = vst [vmem:[#allocation76_spill] sm:$0xff] %v1486_v37  ;;  %v1503_v44 = vunpack.c.h.bf16 %v2187_v38  ;;  %v1523_v38 = vunpack.c.l.bf16 %v2192_v29 }
  0x30   :  { %v2276_v7 = vand.u32 2147450879, %v1284_v49 }
  0x31   :  { %2167 = vst [vmem:[#allocation66_spill] sm:$0xff] %v1404_v3  ;;  %v2169_v3 = vmov %v2166_v11  ;;  %v1441_v11 = vld [vmem:[%s2072_s0 + $0x2e0] sm:$0xff] }
  0x32   :  { %v1426_v53 = vunpack.c.h.bf16 %v2169_v3  ;;  %2172 = vst [vmem:[#allocation70_spill] sm:$0xff] %v1441_v11  ;;  %v2188_v3 = vand.u32 2147450879, %v1082_v34  ;;  %v2194_v34 = vand.u32 2147450879, %v1105_v43 }
  0x33   :  { %v2204_v43 = vand.u32 2147450879, %v1127_v59  ;;  %v2212_v59 = vand.u32 2147450879, %v1149_v1  ;;  %v2220_v1 = vand.u32 2147450879, %v1169_v10 }
  0x34   :  { %2170 = vst [vmem:[#allocation68_spill] sm:$0xff] %v1426_v53  ;;  %v1448_v53 = vunpack.c.l.bf16 %v2173_v30  ;;  %v1465_v30 = vunpack.c.h.bf16 %v2177_v14  ;;  %v1479_v14 = vunpack.c.h.bf16 %v2180_v21  ;;  %v1493_v21 = vunpack.c.h.bf16 %v2184_v22 }
  0x35   :  { %v1507_v48 = vunpack.c.l.bf16 %v2188_v3  ;;  %v2189_v27 = vmov %v2188_v3  ;;  %v1527_v3 = vunpack.c.h.bf16 %v2193_v2  ;;  %v2195_v61 = vmov %v2194_v34 }
  0x36   :  { %2174 = vst [vmem:[#allocation71_spill] sm:$0xff] %v1448_v53  ;;  %2181 = vst [vmem:[#allocation75_spill] sm:$0xff] %v1479_v14  ;;  %v1511_v22 = vunpack.c.h.bf16 %v2189_v27  ;;  %v2190_v53 = vand.u32 2147450879, %v1095_v28  ;;  %v1531_v27 = vunpack.c.l.bf16 %v2194_v34  ;;  %v2196_v28 = vand.u32 2147450879, %v1117_v54 }
  0x37   :  { %2185 = vst [vmem:[#allocation77_spill] sm:$0xff] %v1493_v21  ;;  %v1547_v2 = vunpack.c.l.bf16 %v2200_v31  ;;  %v1551_v34 = vunpack.c.h.bf16 %v2202_v24  ;;  %v2206_v57 = vmov %v2204_v43  ;;  %v2208_v54 = vand.u32 2147450879, %v1139_v9 }
  0x38   :  { %v1515_v20 = vunpack.c.l.bf16 %v2190_v53  ;;  %v2191_v26 = vmov %v2190_v53  ;;  %v1535_v53 = vunpack.c.h.bf16 %v2195_v61  ;;  %v2198_v11 = vmov %v2196_v28 }
  0x39   :  { %v1519_v33 = vunpack.c.h.bf16 %v2191_v26  ;;  %v1539_v26 = vunpack.c.l.bf16 %v2196_v28  ;;  %v1543_v29 = vunpack.c.h.bf16 %v2198_v11  ;;  %2201 = vst [vmem:[#allocation80_spill] sm:$0xff] %v1547_v2  ;;  %2203 = vst [vmem:[#allocation81_spill] sm:$0xff] %v1551_v34  ;;  %v1555_v61 = vunpack.c.l.bf16 %v2204_v43 }
  0x3a   :  { %v1559_v28 = vunpack.c.h.bf16 %v2206_v57  ;;  %v1563_v11 = vunpack.c.l.bf16 %v2208_v54  ;;  %v2209_v21 = vmov %v2208_v54  ;;  %v1571_v24 = vunpack.c.l.bf16 %v2210_v58 }
  0x3b   :  { %2197 = vst [vmem:[#allocation78_spill] sm:$0xff] %v1539_v26  ;;  %2199 = vst [vmem:[#allocation79_spill] sm:$0xff] %v1543_v29  ;;  %v1567_v31 = vunpack.c.h.bf16 %v2209_v21  ;;  %v2211_v34 = vmov %v2210_v58  ;;  %v1579_v57 = vunpack.c.l.bf16 %v2212_v59  ;;  %v2214_v9 = vand.u32 2147450879, %v1159_v45 }
  0x3c   :  { %2205 = vst [vmem:[#allocation82_spill] sm:$0xff] %v1555_v61  ;;  %2207 = vst [vmem:[#allocation83_spill] sm:$0xff] %v1559_v28  ;;  %v1575_v43 = vunpack.c.h.bf16 %v2211_v34  ;;  %v2213_v28 = vmov %v2212_v59  ;;  %v1595_v34 = vunpack.c.l.bf16 %v2216_v6  ;;  %v2218_v2 = vmov %v2216_v6 }
  0x3d   :  { %v1583_v54 = vunpack.c.h.bf16 %v2213_v28  ;;  %v1587_v21 = vunpack.c.l.bf16 %v2214_v9  ;;  %v2215_v61 = vmov %v2214_v9  ;;  %v1599_v59 = vunpack.c.h.bf16 %v2218_v2 }
  0x3e   :  { %v1591_v58 = vunpack.c.h.bf16 %v2215_v61  ;;  %2217 = vst [vmem:[#allocation84_spill] sm:$0xff] %v1595_v34  ;;  %v1603_v28 = vunpack.c.l.bf16 %v2220_v1  ;;  %v2222_v37 = vmov %v2220_v1  ;;  %v2224_v45 = vand.u32 2147450879, %v1179_v55 }
  0x3f   :  { %2219 = vst [vmem:[#allocation85_spill] sm:$0xff] %v1599_v59  ;;  %v1607_v9 = vunpack.c.h.bf16 %v2222_v37  ;;  %v1619_v2 = vunpack.c.l.bf16 %v2228_v60  ;;  %v2230_v29 = vmov %v2228_v60  ;;  %v2232_v10 = vand.u32 2147450879, %v1189_v52 }
  0x40   :  { %2221 = vst [vmem:[#allocation86_spill] sm:$0xff] %v1603_v28  ;;  %v1611_v61 = vunpack.c.l.bf16 %v2224_v45  ;;  %v2226_v14 = vmov %v2224_v45  ;;  %v1623_v1 = vunpack.c.h.bf16 %v2230_v29  ;;  %v2234_v55 = vand.u32 2147450879, %v1199_v40 }
  0x41   :  { %2223 = vst [vmem:[#allocation87_spill] sm:$0xff] %v1607_v9  ;;  %v1615_v6 = vunpack.c.h.bf16 %v2226_v14  ;;  %2229 = vst [vmem:[#allocation90_spill] sm:$0xff] %v1619_v2  ;;  %v1627_v37 = vunpack.c.l.bf16 %v2232_v10  ;;  %v2233_v9 = vmov %v2232_v10  ;;  %v1643_v29 = vunpack.c.l.bf16 %v2236_v0 }
  0x42   :  { %2225 = vst [vmem:[#allocation88_spill] sm:$0xff] %v1611_v61  ;;  %2231 = vst [vmem:[#allocation91_spill] sm:$0xff] %v1623_v1  ;;  %v1631_v45 = vunpack.c.h.bf16 %v2233_v9  ;;  %v1635_v14 = vunpack.c.l.bf16 %v2234_v55  ;;  %v2237_v1 = vmov %v2236_v0  ;;  %v2238_v52 = vand.u32 2147450879, %v1209_v15 }
  0x43   :  { %2227 = vst [vmem:[#allocation89_spill] sm:$0xff] %v1615_v6  ;;  %v2235_v6 = vmov %v2234_v55  ;;  %v1647_v10 = vunpack.c.h.bf16 %v2237_v1  ;;  %v2241_v40 = vand.u32 2147450879, %v1219_v17  ;;  %v1667_v1 = vunpack.c.l.bf16 %v2245_v18 }
  0x44   :  { %v1639_v60 = vunpack.c.h.bf16 %v2235_v6  ;;  %v1651_v9 = vunpack.c.l.bf16 %v2238_v52  ;;  %v2239_v2 = vmov %v2238_v52  ;;  %v2247_v28 = vmov %v2245_v18 }
  0x45   :  { %v1655_v55 = vunpack.c.h.bf16 %v2239_v2  ;;  %v1659_v6 = vunpack.c.l.bf16 %v2241_v40  ;;  %v2243_v61 = vmov %v2241_v40  ;;  %2246 = vst [vmem:[#allocation95_spill] sm:$0xff] %v1667_v1  ;;  %v1671_v52 = vunpack.c.h.bf16 %v2247_v28 }
  0x46   :  { %v1663_v0 = vunpack.c.h.bf16 %v2243_v61  ;;  %v2249_v15 = vand.u32 2147450879, %v1229_v25  ;;  %v2253_v17 = vand.u32 2147450879, %v1239_v12  ;;  %v1691_v28 = vunpack.c.l.bf16 %v2257_v47 }
  0x47   :  { %2240 = vst [vmem:[#allocation92_spill] sm:$0xff] %v1655_v55  ;;  %2242 = vst [vmem:[#allocation93_spill] sm:$0xff] %v1659_v6  ;;  %v2259_v25 = vand.u32 2147450879, %v1249_v5  ;;  %v2261_v12 = vand.u32 2147450879, %v1259_v42 }
  0x48   :  { %2244 = vst [vmem:[#allocation94_spill] sm:$0xff] %v1663_v0  ;;  %2248 = vst [vmem:[#allocation96_spill] sm:$0xff] %v1671_v52  ;;  %v1675_v2 = vunpack.c.l.bf16 %v2249_v15  ;;  %v2251_v59 = vmov %v2249_v15  ;;  %v1683_v61 = vunpack.c.l.bf16 %v2253_v17  ;;  %v2255_v0 = vmov %v2253_v17 }
  0x49   :  { %v1679_v40 = vunpack.c.h.bf16 %v2251_v59  ;;  %v1687_v18 = vunpack.c.h.bf16 %v2255_v0  ;;  %v2258_v52 = vmov %v2257_v47  ;;  %v1699_v59 = vunpack.c.l.bf16 %v2259_v25 }
  0x4a   :  { %2250 = vst [vmem:[#allocation97_spill] sm:$0xff] %v1675_v2  ;;  %2254 = vst [vmem:[#allocation99_spill] sm:$0xff] %v1683_v61  ;;  %v1695_v15 = vunpack.c.h.bf16 %v2258_v52  ;;  %v1707_v0 = vunpack.c.l.bf16 %v2261_v12  ;;  %v1715_v52 = vunpack.c.l.bf16 %v2264_v46  ;;  %v2266_v61 = vmov %v2264_v46 }
  0x4b   :  { %2252 = vst [vmem:[#allocation98_spill] sm:$0xff] %v1679_v40  ;;  %2256 = vst [vmem:[#allocation100_spill] sm:$0xff] %v1687_v18  ;;  %v2260_v40 = vmov %v2259_v25  ;;  %v2262_v18 = vmov %v2261_v12  ;;  %v1719_v25 = vunpack.c.h.bf16 %v2266_v61  ;;  %v2268_v5 = vand.u32 2147450879, %v1269_v32 }
  0x4c   :  { %v1703_v17 = vunpack.c.h.bf16 %v2260_v40  ;;  %v1711_v47 = vunpack.c.h.bf16 %v2262_v18  ;;  %2265 = vst [vmem:[#allocation102_spill] sm:$0xff] %v1715_v52  ;;  %v2272_v42 = vand.u32 2147450879, %v1279_v50  ;;  %v1739_v61 = vunpack.c.l.bf16 %v2276_v7  ;;  %v2302_v52 = vld [vmem:[#allocation45_spill] sm:$0xff] }
  0x4d   :  { %2267 = vst [vmem:[#allocation103_spill] sm:$0xff] %v1719_v25  ;;  %v1723_v40 = vunpack.c.l.bf16 %v2268_v5  ;;  %v2270_v2 = vmov %v2268_v5  ;;  %v474_v5 = vadd.f32 %v1090_v39, %v1234_v51  ;;  %v2289_v39 = vld [vmem:[#allocation54_spill] sm:$0xff]  ;;  %v2301_v25 = vld [vmem:[#allocation51_spill] sm:$0xff] }
  0x4e   :  { %2263 = vst [vmem:[#allocation101_spill] sm:$0xff] %v1711_v47  ;;  %v1727_v12 = vunpack.c.h.bf16 %v2270_v2  ;;  %v1731_v18 = vunpack.c.l.bf16 %v2272_v42  ;;  %v2274_v1 = vmov %v2272_v42  ;;  %2277 = vst [vmem:[#allocation108_spill] sm:$0xff] %v1739_v61  ;;  %v2280_v2 = vand.u32 2147450879, %v1289_v56 }
  0x4f   :  { %2269 = vst [vmem:[#allocation104_spill] sm:$0xff] %v1723_v40  ;;  %v1735_v46 = vunpack.c.h.bf16 %v2274_v1  ;;  %v2278_v40 = vmov %v2276_v7  ;;  %v2284_v1 = vld [vmem:[#allocation34_spill] sm:$0xff]  ;;  %v2286_v7 = vld [vmem:[#allocation53_spill] sm:$0xff]  ;;  %v496_v47 = vadd.f32 %v2302_v52, %v2301_v25  ;;  %v2314_v25 = vld [vmem:[#allocation32_spill] sm:$0xff] }
  0x50   :  { %2271 = vst [vmem:[#allocation105_spill] sm:$0xff] %v1727_v12  ;;  %2273 = vst [vmem:[#allocation106_spill] sm:$0xff] %v1731_v18  ;;  %v1745_v32 = vunpack.c.h.bf16 %v2278_v40  ;;  %v1749_v12 = vunpack.c.l.bf16 %v2280_v2  ;;  %v2282_v42 = vmov %v2280_v2  ;;  %v2287_v61 = vand.u32 2147450879, %v2286_v7  ;;  %v2300_v7 = vld [vmem:[#allocation42_spill] sm:$0xff]  ;;  %v2313_v52 = vld [vmem:[#allocation37_spill] sm:$0xff] }
  0x51   :  { %2275 = vst [vmem:[#allocation107_spill] sm:$0xff] %v1735_v46  ;;  %v1753_v50 = vunpack.c.h.bf16 %v2282_v42  ;;  %v2285_v46 = vld [vmem:[#allocation27_spill] sm:$0xff]  ;;  %v2290_v40 = vand.u32 2147450879, %v2289_v39 }
  0x52   :  { %2279 = vst [vmem:[#allocation109_spill] sm:$0xff] %v1745_v32  ;;  %2281 = vst [vmem:[#allocation110_spill] sm:$0xff] %v1749_v12  ;;  %v506_v18 = vadd.f32 %v2285_v46, %v2284_v1  ;;  %v1759_v6 = vunpack.c.l.bf16 %v2287_v61  ;;  %v2288_v51 = vmov %v2287_v61  ;;  %v2294_v42 = vld [vmem:[#allocation55_spill] sm:$0xff]  ;;  %v2299_v1 = vld [vmem:[#allocation50_spill] sm:$0xff] }
  0x53   :  { %2283 = vst [vmem:[#allocation111_spill] sm:$0xff] %v1753_v50  ;;  %v1763_v49 = vunpack.c.h.bf16 %v2288_v51  ;;  %v1767_v32 = vunpack.c.l.bf16 %v2290_v40  ;;  %v2292_v2 = vmov %v2290_v40  ;;  %v2295_v50 = vand.u32 2147450879, %v2294_v42  ;;  %v2303_v40 = vld [vmem:[#allocation57_spill] sm:$0xff] }
  0x54   :  { %v1771_v56 = vunpack.c.h.bf16 %v2292_v2  ;;  %v485_v51 = vadd.f32 %v2300_v7, %v2299_v1  ;;  %v2304_v23 = vand.u32 2147450879, %v2303_v40  ;;  %v2309_v42 = vld [vmem:[#allocation29_spill] sm:$0xff]  ;;  %v2312_v1 = vld [vmem:[#allocation52_spill] sm:$0xff] }
  0x55   :  { %2291 = vst [vmem:[#allocation34_spill] sm:$0xff] %v1767_v32  ;;  %v1775_v12 = vunpack.c.l.bf16 %v2295_v50  ;;  %v2297_v46 = vmov %v2295_v50  ;;  %v475_v50 = vadd.f32 %v474_v5, %v1499_v4  ;;  %v507_v7 = vadd.f32 %v506_v18, %v2312_v1  ;;  %v2318_v4 = vld [vmem:[#allocation59_spill] sm:$0xff] }
  0x56   :  { %2293 = vst [vmem:[#allocation27_spill] sm:$0xff] %v1771_v56  ;;  %v1779_v61 = vunpack.c.h.bf16 %v2297_v46  ;;  %v1787_v26 = vunpack.c.l.bf16 %v2304_v23  ;;  %v2306_v39 = vmov %v2304_v23  ;;  %v528_v32 = vadd.f32 %v2314_v25, %v2313_v52  ;;  %v2315_v23 = vld [vmem:[#allocation38_spill] sm:$0xff]  ;;  %v2327_v25 = vld [vmem:[#allocation39_spill] sm:$0xff] }
  0x57   :  { %2296 = vst [vmem:[#allocation53_spill] sm:$0xff] %v1775_v12  ;;  %v1791_v2 = vunpack.c.h.bf16 %v2306_v39  ;;  %v2308_v12 = vld [vmem:[#allocation35_spill] sm:$0xff]  ;;  %v2319_v5 = vand.u32 2147450879, %v2318_v4  ;;  %v2323_v18 = vand.u32 2147450879, %v1343_v19 }
  0x58   :  { %2298 = vst [vmem:[#allocation54_spill] sm:$0xff] %v1779_v61  ;;  %2305 = vst [vmem:[#allocation55_spill] sm:$0xff] %v1787_v26  ;;  %v517_v46 = vadd.f32 %v2309_v42, %v2308_v12  ;;  %v2310_v61 = vld [vmem:[#allocation58_spill] sm:$0xff]  ;;  %v2316_v26 = vld [vmem:[#allocation33_spill] sm:$0xff] }
  0x59   :  { %2307 = vst [vmem:[#allocation50_spill] sm:$0xff] %v1791_v2  ;;  %v2311_v56 = vand.u32 2147450879, %v2310_v61  ;;  %v539_v55 = vadd.f32 %v2316_v26, %v2315_v23  ;;  %v1811_v2 = vunpack.c.l.bf16 %v2319_v5  ;;  %v2321_v12 = vmov %v2319_v5  ;;  %v2328_v23 = vld [vmem:[#allocation36_spill] sm:$0xff] }
  0x5a   :  { %v1819_v42 = vunpack.c.l.bf16 %v2323_v18  ;;  %v2325_v1 = vmov %v2323_v18  ;;  %v486_v26 = vadd.f32 %v485_v51, %v1503_v44  ;;  %v497_v61 = vadd.f32 %v496_v47, %v1507_v48  ;;  %v2331_v19 = vld [vmem:[#allocation56_spill] sm:$0xff] }
  0x5b   :  { %v1798_v34 = vunpack.c.l.bf16 %v2311_v56  ;;  %v2317_v40 = vmov %v2311_v56  ;;  %2320 = vst [vmem:[#allocation42_spill] sm:$0xff] %v1811_v2  ;;  %v1815_v56 = vunpack.c.h.bf16 %v2321_v12  ;;  %v1823_v52 = vunpack.c.h.bf16 %v2325_v1  ;;  %v2333_v47 = vld [vmem:[#allocation60_spill] sm:$0xff] }
  0x5c   :  { %v1807_v39 = vunpack.c.h.bf16 %v2317_v40  ;;  %2324 = vst [vmem:[#allocation45_spill] sm:$0xff] %v1819_v42  ;;  %v550_v40 = vadd.f32 %v2328_v23, %v2327_v25  ;;  %v2329_v5 = vand.u32 2147450879, %v1353_v36  ;;  %v476_v18 = vadd.f32 %v475_v50, %v1563_v11  ;;  %v2334_v25 = vld [vmem:[#allocation62_spill] sm:$0xff] }
  0x5d   :  { %2322 = vst [vmem:[#allocation51_spill] sm:$0xff] %v1815_v56  ;;  %2326 = vst [vmem:[#allocation57_spill] sm:$0xff] %v1823_v52  ;;  %v518_v1 = vadd.f32 %v517_v46, %v2331_v19  ;;  %v2332_v52 = vand.u32 2147450879, %v1365_v16  ;;  %v508_v48 = vadd.f32 %v507_v7, %v1511_v22  ;;  %v529_v51 = vadd.f32 %v528_v32, %v2333_v47  ;;  %v2340_v7 = vld [vmem:[#allocation63_spill] sm:$0xff] }
  0x5e   :  { %v1831_v4 = vunpack.c.l.bf16 %v2329_v5  ;;  %v2330_v12 = vmov %v2329_v5  ;;  %v540_v23 = vadd.f32 %v539_v55, %v2334_v25  ;;  %v2336_v36 = vand.u32 2147450879, %v1370_v35 }
  0x5f   :  { %v1835_v56 = vunpack.c.h.bf16 %v2330_v12  ;;  %v1841_v44 = vunpack.c.l.bf16 %v2332_v52  ;;  %v2335_v5 = vmov %v2332_v52  ;;  %v2338_v46 = vand.u32 2147450879, %v1375_v62 }
  0x60   :  { %v1848_v42 = vunpack.c.h.bf16 %v2335_v5  ;;  %v1852_v12 = vunpack.c.l.bf16 %v2336_v36  ;;  %v2337_v11 = vmov %v2336_v36  ;;  %v487_v16 = vadd.f32 %v486_v26, %v1567_v31 }
  0x61   :  { %v1856_v50 = vunpack.c.h.bf16 %v2337_v11  ;;  %v1860_v52 = vunpack.c.l.bf16 %v2338_v46  ;;  %v2339_v22 = vmov %v2338_v46  ;;  %v498_v55 = vadd.f32 %v497_v61, %v1571_v24 }
  0x62   :  { %v1864_v32 = vunpack.c.h.bf16 %v2339_v22  ;;  %v551_v19 = vadd.f32 %v550_v40, %v2340_v7  ;;  %v2341_v47 = vand.u32 2147450879, %v1387_v63  ;;  %v477_v36 = vadd.f32 %v476_v18, %v1627_v37 }
  0x63   :  { %v519_v62 = vadd.f32 %v518_v1, %v1515_v20  ;;  %v2344_v11 = vand.u32 2147450879, %v1414_v41  ;;  %v509_v31 = vadd.f32 %v508_v48, %v1575_v43  ;;  %v530_v24 = vadd.f32 %v529_v51, %v1519_v33  ;;  %v2349_v43 = vld [vmem:[#allocation6_spill] sm:$0xff] }
  0x64   :  { %v1871_v25 = vunpack.c.l.bf16 %v2341_v47  ;;  %v2342_v35 = vmov %v2341_v47  ;;  %v541_v26 = vadd.f32 %v540_v23, %v1523_v38  ;;  %v2346_v63 = vand.u32 2147450879, %v1419_v13  ;;  %v2350_v48 = vld [vmem:[#allocation14_spill] sm:$0xff]  ;;  %v2351_v13 = vld [vmem:[#allocation7_spill] sm:$0xff] }
  0x65   :  { %v1875_v5 = vunpack.c.h.bf16 %v2342_v35  ;;  %v1881_v46 = vunpack.c.l.bf16 %v2344_v11  ;;  %v2345_v61 = vmov %v2344_v11  ;;  %v2348_v18 = vand.u32 2147450879, %v1431_v8  ;;  %v2352_v47 = vld [vmem:[#allocation15_spill] sm:$0xff]  ;;  %v2353_v11 = vld [vmem:[#allocation8_spill] sm:$0xff] }
  0x66   :  { %v1888_v40 = vunpack.c.h.bf16 %v2345_v61  ;;  %v1892_v22 = vunpack.c.l.bf16 %v2346_v63  ;;  %v2347_v20 = vmov %v2346_v63  ;;  %v488_v33 = vadd.f32 %v487_v16, %v1631_v45  ;;  %v2354_v61 = vld [vmem:[#allocation16_spill] sm:$0xff] }
  0x67   :  { %2343 = vst [vmem:[#allocation35_spill] sm:$0xff] %v1875_v5  ;;  %v1896_v37 = vunpack.c.h.bf16 %v2347_v20  ;;  %v1900_v1 = vunpack.c.l.bf16 %v2348_v18  ;;  %v499_v38 = vadd.f32 %v498_v55, %v1635_v14  ;;  %v552_v41 = vadd.f32 %v551_v19, %v1527_v3  ;;  %v2355_v3 = vld [vmem:[#allocation22_spill] sm:$0xff]  ;;  %v2356_v55 = vld [vmem:[#allocation23_spill] sm:$0xff]  ;;  %v2357_v18 = vld [vmem:[#allocation24_spill] sm:$0xff] }
  0x68   :  { %v559_v51 = vadd.f32 %v2350_v48, %v2349_v43  ;;  %v478_v23 = vadd.f32 %v477_v36, %v1691_v28  ;;  %v520_v7 = vadd.f32 %v519_v62, %v1579_v57  ;;  %v570_v35 = vadd.f32 %v2352_v47, %v2351_v13  ;;  %v2358_v36 = vld [vmem:[#allocation9_spill] sm:$0xff]  ;;  %v2360_v43 = vld [vmem:[#allocation10_spill] sm:$0xff]  ;;  %v2362_v47 = vld [vmem:[#allocation40_spill] sm:$0xff] }
  0x69   :  { %v581_v63 = vadd.f32 %v2354_v61, %v2353_v11  ;;  %v510_v20 = vadd.f32 %v509_v31, %v1639_v60  ;;  %v531_v45 = vadd.f32 %v530_v24, %v1583_v54  ;;  %v542_v14 = vadd.f32 %v541_v26, %v1587_v21  ;;  %v2359_v57 = vld [vmem:[#allocation17_spill] sm:$0xff]  ;;  %v2361_v48 = vld [vmem:[#allocation18_spill] sm:$0xff]  ;;  %v2363_v61 = vld [vmem:[#allocation11_spill] sm:$0xff] }
  0x6a   :  { %v560_v16 = vadd.f32 %v559_v51, %v2355_v3  ;;  %v571_v19 = vadd.f32 %v570_v35, %v2356_v55  ;;  %v592_v62 = vadd.f32 %v2359_v57, %v2358_v36  ;;  %v603_v13 = vadd.f32 %v2361_v48, %v2360_v43  ;;  %v2364_v60 = vld [vmem:[#allocation19_spill] sm:$0xff]  ;;  %v2365_v54 = vld [vmem:[#allocation12_spill] sm:$0xff]  ;;  %v2367_v26 = vld [vmem:[#allocation13_spill] sm:$0xff] }
  0x6b   :  { %v582_v28 = vadd.f32 %v581_v63, %v2357_v18  ;;  %v614_v31 = vadd.f32 %v2364_v60, %v2363_v61  ;;  %v2366_v24 = vld [vmem:[#allocation20_spill] sm:$0xff]  ;;  %v2368_v51 = vld [vmem:[#allocation21_spill] sm:$0xff]  ;;  %v2370_v63 = vld [vmem:[#allocation43_spill] sm:$0xff]  ;;  %v489_v43 = vadd.f32 %v488_v33, %v1695_v15 }
  0x6c   :  { %v561_v11 = vadd.f32 %v560_v16, %v2362_v47  ;;  %v625_v21 = vadd.f32 %v2366_v24, %v2365_v54  ;;  %v636_v3 = vadd.f32 %v2368_v51, %v2367_v26  ;;  %v2369_v35 = vld [vmem:[#allocation41_spill] sm:$0xff]  ;;  %v2372_v57 = vld [vmem:[#allocation26_spill] sm:$0xff]  ;;  %v553_v16 = vadd.f32 %v552_v41, %v1591_v58  ;;  %v2374_v61 = vld [vmem:[#allocation28_spill] sm:$0xff] }
  0x6d   :  { %v572_v55 = vadd.f32 %v571_v19, %v2369_v35  ;;  %v583_v18 = vadd.f32 %v582_v28, %v2370_v63  ;;  %v2371_v5 = vld [vmem:[#allocation25_spill] sm:$0xff]  ;;  %v604_v2 = vadd.f32 %v603_v13, %v2372_v57  ;;  %v2373_v48 = vld [vmem:[#allocation66_spill] sm:$0xff]  ;;  %v615_v60 = vadd.f32 %v614_v31, %v2374_v61  ;;  %v2375_v24 = vld [vmem:[#allocation68_spill] sm:$0xff] }
  0x6e   :  { %v593_v36 = vadd.f32 %v592_v62, %v2371_v5  ;;  %v562_v47 = vadd.f32 %v561_v11, %v2373_v48  ;;  %v521_v54 = vadd.f32 %v520_v7, %v1643_v29  ;;  %v2376_v51 = vld [vmem:[#allocation44_spill] sm:$0xff]  ;;  %v2377_v35 = vld [vmem:[#allocation30_spill] sm:$0xff]  ;;  %v500_v5 = vadd.f32 %v499_v38, %v1699_v59  ;;  %v2378_v13 = vld [vmem:[#allocation71_spill] sm:$0xff] }
  0x6f   :  { %v573_v26 = vadd.f32 %v572_v55, %v2375_v24  ;;  %v626_v28 = vadd.f32 %v625_v21, %v2377_v35  ;;  %v584_v15 = vadd.f32 %v583_v18, %v2378_v13  ;;  %v2379_v33 = vld [vmem:[#allocation46_spill] sm:$0xff]  ;;  %v479_v41 = vadd.f32 %v478_v23, %v1759_v6  ;;  %v2380_v7 = vld [vmem:[#allocation31_spill] sm:$0xff]  ;;  %v2382_v18 = vld [vmem:[#allocation92_spill] sm:$0xff] }
  0x70   :  { %v594_v19 = vadd.f32 %v593_v36, %v2376_v51  ;;  %v563_v62 = vadd.f32 %v562_v47, %v1531_v27  ;;  %v605_v58 = vadd.f32 %v604_v2, %v2379_v33  ;;  %v511_v11 = vadd.f32 %v510_v20, %v1703_v17  ;;  %v2381_v38 = vld [vmem:[#allocation47_spill] sm:$0xff]  ;;  %v2383_v23 = vld [vmem:[#allocation48_spill] sm:$0xff]  ;;  %v2384_v20 = vld [vmem:[#allocation34_spill] sm:$0xff] }
  0x71   :  { %v532_v29 = vadd.f32 %v531_v45, %v1647_v10  ;;  %v637_v31 = vadd.f32 %v636_v3, %v2380_v7  ;;  %v490_v55 = vadd.f32 %v489_v43, %v1763_v49  ;;  %v574_v21 = vadd.f32 %v573_v26, %v1535_v53  ;;  %v2385_v45 = vld [vmem:[#allocation84_spill] sm:$0xff]  ;;  %v2386_v36 = vld [vmem:[#allocation78_spill] sm:$0xff]  ;;  %v2388_v43 = vld [vmem:[#allocation27_spill] sm:$0xff] }
  0x72   :  { %v595_v59 = vadd.f32 %v594_v19, %v1465_v30  ;;  %v616_v27 = vadd.f32 %v615_v60, %v2381_v38  ;;  %v522_v63 = vadd.f32 %v521_v54, %v1707_v0  ;;  %v543_v2 = vadd.f32 %v542_v14, %v1651_v9  ;;  %v2387_v57 = vld [vmem:[#allocation74_spill] sm:$0xff]  ;;  %v2389_v47 = vld [vmem:[#allocation101_spill] sm:$0xff]  ;;  %v2392_v54 = vld [vmem:[#allocation79_spill] sm:$0xff] }
  0x73   :  { %v554_v6 = vadd.f32 %v553_v16, %v2382_v18  ;;  %v627_v17 = vadd.f32 %v626_v28, %v2383_v23  ;;  %v501_v10 = vadd.f32 %v500_v5, %v2384_v20  ;;  %v564_v3 = vadd.f32 %v563_v62, %v2385_v45  ;;  %v2390_v61 = vld [vmem:[#allocation49_spill] sm:$0xff]  ;;  %v2393_v26 = vld [vmem:[#allocation75_spill] sm:$0xff]  ;;  %v2395_v28 = vld [vmem:[#allocation102_spill] sm:$0xff] }
  0x74   :  { %v585_v49 = vadd.f32 %v584_v15, %v2386_v36  ;;  %v606_v53 = vadd.f32 %v605_v58, %v2387_v57  ;;  %v480_v30 = vadd.f32 %v479_v41, %v1831_v4  ;;  %v512_v48 = vadd.f32 %v511_v11, %v2388_v43  ;;  %v2391_v16 = vld [vmem:[#allocation85_spill] sm:$0xff]  ;;  %v2396_v62 = vld [vmem:[#allocation103_spill] sm:$0xff]  ;;  %v2397_v13 = vld [vmem:[#allocation76_spill] sm:$0xff] }
  0x75   :  { %v533_v0 = vadd.f32 %v532_v29, %v2389_v47  ;;  %v638_v9 = vadd.f32 %v637_v31, %v2390_v61  ;;  %v491_v14 = vadd.f32 %v490_v55, %v1835_v56  ;;  %v575_v60 = vadd.f32 %v574_v21, %v2391_v16  ;;  %v2394_v19 = vld [vmem:[#allocation53_spill] sm:$0xff]  ;;  %v2399_v11 = vld [vmem:[#allocation86_spill] sm:$0xff]  ;;  %v2400_v29 = vld [vmem:[#allocation80_spill] sm:$0xff] }
  0x76   :  { %v596_v24 = vadd.f32 %v595_v59, %v2392_v54  ;;  %v617_v51 = vadd.f32 %v616_v27, %v2393_v26  ;;  %v523_v35 = vadd.f32 %v522_v63, %v2394_v19  ;;  %v544_v5 = vadd.f32 %v543_v2, %v2395_v28  ;;  %v2398_v58 = vld [vmem:[#allocation93_spill] sm:$0xff]  ;;  %v2401_v21 = vld [vmem:[#allocation54_spill] sm:$0xff]  ;;  %v2409_v57 = vld [vmem:[#allocation104_spill] sm:$0xff] }
  0x77   :  { %v555_v4 = vadd.f32 %v554_v6, %v2396_v62  ;;  %v628_v15 = vadd.f32 %v627_v17, %v2397_v13  ;;  %v502_v33 = vadd.f32 %v501_v10, %v1841_v44  ;;  %v565_v41 = vadd.f32 %v564_v3, %v2398_v58  ;;  %v2402_v38 = vld [vmem:[#allocation77_spill] sm:$0xff]  ;;  %v2403_v2 = vld [vmem:[#allocation94_spill] sm:$0xff]  ;;  %v2404_v6 = vld [vmem:[#allocation87_spill] sm:$0xff] }
  0x78   :  { %v586_v56 = vadd.f32 %v585_v49, %v2399_v11  ;;  %v607_v7 = vadd.f32 %v606_v53, %v2400_v29  ;;  %v481_v31 = vadd.f32 %v480_v30, %v1881_v46  ;;  %v513_v55 = vadd.f32 %v512_v48, %v1848_v42  ;;  %v2405_v23 = vld [vmem:[#allocation81_spill] sm:$0xff]  ;;  %v2407_v46 = vld [vmem:[#allocation55_spill] sm:$0xff]  ;;  %v2408_v42 = vld [vmem:[#allocation82_spill] sm:$0xff] }
  0x79   :  { %v534_v59 = vadd.f32 %v533_v0, %v2401_v21  ;;  %v639_v27 = vadd.f32 %v638_v9, %v2402_v38  ;;  %v492_v63 = vadd.f32 %v491_v14, %v1888_v40  ;;  %v576_v18 = vadd.f32 %v575_v60, %v2403_v2  ;;  %v2410_v40 = vld [vmem:[#allocation95_spill] sm:$0xff]  ;;  %v2411_v43 = vld [vmem:[#allocation88_spill] sm:$0xff]  ;;  %v2414_v14 = vld [vmem:[#allocation105_spill] sm:$0xff] }
  0x7a   :  { %v597_v44 = vadd.f32 %v596_v24, %v2404_v6  ;;  %v618_v17 = vadd.f32 %v617_v51, %v2405_v23  ;;  %v2406_v20 = vand.u32 2147450879, %v1431_v8  ;;  %v524_v45 = vadd.f32 %v523_v35, %v1852_v12  ;;  %v2412_v8 = vld [vmem:[#allocation50_spill] sm:$0xff]  ;;  %v2413_v9 = vld [vmem:[#allocation83_spill] sm:$0xff]  ;;  %v2415_v60 = vld [vmem:[#allocation96_spill] sm:$0xff] }
  0x7b   :  { %v545_v3 = vadd.f32 %v544_v5, %v2407_v46  ;;  %v629_v36 = vadd.f32 %v628_v15, %v2408_v42  ;;  %v503_v49 = vadd.f32 %v502_v33, %v1892_v22  ;;  %v566_v53 = vadd.f32 %v565_v41, %v2409_v57  ;;  %v2416_v24 = vld [vmem:[#allocation89_spill] sm:$0xff]  ;;  %v2419_v5 = vld [vmem:[#allocation90_spill] sm:$0xff]  ;;  %v2426_v38 = vld [vmem:[#allocation64_spill] sm:$0xff] }
  0x7c   :  { %v444_v10 = vunpack.c.h.bf16 %v2406_v20  ;;  %v587_v30 = vadd.f32 %v586_v56, %v2410_v40  ;;  %v608_v48 = vadd.f32 %v607_v7, %v2411_v43  ;;  %v514_v47 = vadd.f32 %v513_v55, %v1896_v37  ;;  %v2417_v51 = vld [vmem:[#allocation69_spill] sm:$0xff]  ;;  %v2423_v7 = vld [vmem:[#allocation91_spill] sm:$0xff]  ;;  %v2425_v21 = vld [vmem:[#allocation98_spill] sm:$0xff] }
  0x7d   :  { %v535_v0 = vadd.f32 %v534_v59, %v1856_v50  ;;  %v556_v61 = vadd.f32 %v555_v4, %v2412_v8  ;;  %v640_v12 = vadd.f32 %v639_v27, %v2413_v9  ;;  %v577_v16 = vadd.f32 %v576_v18, %v2414_v14  ;;  %v2420_v4 = vld [vmem:[#allocation106_spill] sm:$0xff]  ;;  %v2421_v15 = vld [vmem:[#allocation97_spill] sm:$0xff]  ;;  %v2430_v23 = vld [vmem:[#allocation99_spill] sm:$0xff] }
  0x7e   :  { %v598_v54 = vadd.f32 %v597_v44, %v2415_v60  ;;  %v619_v22 = vadd.f32 %v618_v17, %v2416_v24  ;;  %v793_v26 = vadd.f32 %v492_v63, %v481_v31  ;;  %v2418_v19 = vand.u32 2147450879, %v2417_v51  ;;  %v2428_v2 = vld [vmem:[#allocation70_spill] sm:$0xff]  ;;  %v2441_v14 = vld [vmem:[#allocation65_spill] sm:$0xff] }
  0x7f   :  { %v525_v28 = vadd.f32 %v524_v45, %v1900_v1  ;;  %v546_v37 = vadd.f32 %v545_v3, %v1860_v52  ;;  %v630_v50 = vadd.f32 %v629_v36, %v2419_v5  ;;  %v567_v62 = vadd.f32 %v566_v53, %v1798_v34  ;;  %v2424_v52 = vld [vmem:[#allocation107_spill] sm:$0xff]  ;;  %v2431_v20 = vld [vmem:[#allocation42_spill] sm:$0xff]  ;;  %v2432_v45 = vld [vmem:[#allocation108_spill] sm:$0xff] }
  0x80   :  { %v445_v35 = vunpack.c.l.bf16 %v2418_v19  ;;  %v588_v13 = vadd.f32 %v587_v30, %v2420_v4  ;;  %v609_v33 = vadd.f32 %v608_v48, %v2421_v15  ;;  %v794_v58 = vadd.f32 %v793_v26, %v503_v49  ;;  %v2435_v53 = vld [vmem:[#allocation100_spill] sm:$0xff]  ;;  %v2436_v30 = vld [vmem:[#allocation35_spill] sm:$0xff]  ;;  %v2445_v26 = vld [vmem:[#allocation110_spill] sm:$0xff] }
  0x81   :  { %v2422_v41 = vmov %v2418_v19  ;;  %v536_v56 = vadd.f32 %v535_v0, %v444_v10  ;;  %v557_v29 = vadd.f32 %v556_v61, %v1864_v32  ;;  %v641_v31 = vadd.f32 %v640_v12, %v2423_v7  ;;  %v2437_v48 = vld [vmem:[#allocation51_spill] sm:$0xff]  ;;  %v2438_v0 = vld [vmem:[#allocation109_spill] sm:$0xff] }
  0x82   :  { %v446_v11 = vunpack.c.h.bf16 %v2422_v41  ;;  %v578_v1 = vadd.f32 %v577_v16, %v1807_v39  ;;  %v599_v55 = vadd.f32 %v598_v54, %v2424_v52  ;;  %v620_v59 = vadd.f32 %v619_v22, %v2425_v21  ;;  %v2439_v61 = vld [vmem:[#allocation61_spill] sm:$0xff]  ;;  %v2443_v54 = vld [vmem:[#allocation72_spill] sm:$0xff]  ;;  %v2450_v41 = vld [vmem:[#allocation111_spill] sm:$0xff] }
  0x83   :  { %v795_v34 = vadd.f32 %v794_v58, %v514_v47  ;;  %v2427_v27 = vand.u32 2147450879, %v2426_v38  ;;  %v2429_v18 = vand.u32 2147450879, %v2428_v2  ;;  %v547_v44 = vadd.f32 %v546_v37, %v445_v35  ;;  %v166_v19 = vld [vmem:[%s2072_s0 + $0x2f8] sm:$0xff] }
  0x84   :  { %v631_v17 = vadd.f32 %v630_v50, %v2430_v23  ;;  %v568_v32 = vadd.f32 %v567_v62, %v1871_v25  ;;  %v589_v10 = vadd.f32 %v588_v13, %v2431_v20  ;;  %v610_v39 = vadd.f32 %v609_v33, %v2432_v45  ;;  %v2446_v37 = vld [vmem:[#allocation45_spill] sm:$0xff] }
  0x85   :  { %v433_v63 = vunpack.c.l.bf16 %v2427_v27  ;;  %v447_v6 = vunpack.c.l.bf16 %v2429_v18  ;;  %v796_v46 = vadd.f32 %v795_v34, %v525_v28  ;;  %v2433_v3 = vmov %v2427_v27  ;;  %v2451_v7 = vld [vmem:[#allocation57_spill] sm:$0xff] }
  0x86   :  { %v434_v42 = vunpack.c.h.bf16 %v2433_v3  ;;  %v2434_v36 = vmov %v2429_v18  ;;  %v558_v57 = vadd.f32 %v557_v29, %v446_v11  ;;  %v642_v40 = vadd.f32 %v641_v31, %v2435_v53  ;;  %v2454_v34 = vld [vmem:[#allocation73_spill] sm:$0xff] }
  0x87   :  { %v448_v49 = vunpack.c.h.bf16 %v2434_v36  ;;  %v579_v43 = vadd.f32 %v578_v1, %v2436_v30  ;;  %v600_v47 = vadd.f32 %v599_v55, %v2437_v48  ;;  %v621_v25 = vadd.f32 %v620_v59, %v2438_v0  ;;  %v2452_v55 = vld [vmem:[#allocation67_spill] sm:$0xff] }
  0x88   :  { %v797_v8 = vadd.f32 %v796_v46, %v536_v56  ;;  %v2440_v9 = vand.u32 2147450879, %v2439_v61  ;;  %v2442_v16 = vand.u32 2147450879, %v2441_v14  ;;  %v2444_v24 = vand.u32 2147450879, %v2443_v54 }
  0x89   :  { %v632_v51 = vadd.f32 %v631_v17, %v2445_v26  ;;  %v569_v35 = vadd.f32 %v568_v32, %v447_v6  ;;  %v590_v28 = vadd.f32 %v589_v10, %v433_v63  ;;  %v611_v5 = vadd.f32 %v610_v39, %v2446_v37 }
  0x8a   :  { %v421_v12 = vunpack.c.l.bf16 %v2440_v9  ;;  %v435_v60 = vunpack.c.l.bf16 %v2442_v16  ;;  %v449_v22 = vunpack.c.l.bf16 %v2444_v24  ;;  %v798_v50 = vadd.f32 %v797_v8, %v547_v44 }
  0x8b   :  { %v2447_v62 = vmov %v2440_v9  ;;  %v2448_v13 = vmov %v2442_v16  ;;  %v2449_v33 = vmov %v2444_v24  ;;  %v643_v11 = vadd.f32 %v642_v40, %v2450_v41 }
  0x8c   :  { %v422_v4 = vunpack.c.h.bf16 %v2447_v62  ;;  %v436_v15 = vunpack.c.h.bf16 %v2448_v13  ;;  %v450_v58 = vunpack.c.h.bf16 %v2449_v33  ;;  %v580_v56 = vadd.f32 %v579_v43, %v448_v49 }
  0x8d   :  { %v601_v29 = vadd.f32 %v600_v47, %v434_v42  ;;  %v622_v31 = vadd.f32 %v621_v25, %v2451_v7  ;;  %v799_v1 = vadd.f32 %v798_v50, %v558_v57  ;;  %v262_v52 = vand.u32 2147450879, %v166_v19 }
  0x8e   :  { %v2453_v21 = vand.u32 2147450879, %v2452_v55  ;;  %v2455_v38 = vand.u32 2147450879, %v2454_v34  ;;  %v591_v63 = vadd.f32 %v590_v28, %v449_v22  ;;  %v612_v2 = vadd.f32 %v611_v5, %v435_v60 }
  0x8f   :  { %v633_v18 = vadd.f32 %v632_v51, %v421_v12  ;;  %v800_v6 = vadd.f32 %v799_v1, %v569_v35  ;;  %v602_v20 = vadd.f32 %v601_v29, %v450_v58  ;;  %v623_v10 = vadd.f32 %v622_v31, %v436_v15 }
  0x90   :  { %v437_v59 = vunpack.c.l.bf16 %v2453_v21  ;;  %v451_v27 = vunpack.c.l.bf16 %v2455_v38  ;;  %v2456_v44 = vmov %v2453_v21  ;;  %v2457_v17 = vmov %v2455_v38 }
  0x91   :  { %v438_v23 = vunpack.c.h.bf16 %v2456_v44  ;;  %v452_v32 = vunpack.c.h.bf16 %v2457_v17  ;;  %v644_v45 = vadd.f32 %v643_v11, %v422_v4  ;;  %v801_v39 = vadd.f32 %v800_v6, %v580_v56 }
  0x92   :  { %v453_v46 = vunpack.c.l.bf16 %v262_v52  ;;  %v613_v3 = vadd.f32 %v612_v2, %v451_v27  ;;  %v634_v42 = vadd.f32 %v633_v18, %v437_v59  ;;  %v454_v49 = vunpack.c.h.bf16 %v262_v52 }
  0x93   :  { %v802_v36 = vadd.f32 %v801_v39, %v591_v63  ;;  %v624_v57 = vadd.f32 %v623_v10, %v452_v32  ;;  %v645_v53 = vadd.f32 %v644_v45, %v438_v23 }
  0x94   :  { %v635_v30 = vadd.f32 %v634_v42, %v453_v46 }
  0x95   :  { %v803_v40 = vadd.f32 %v802_v36, %v602_v20  ;;  %v646_v48 = vadd.f32 %v645_v53, %v454_v49 }
  0x97   :  { %v804_v43 = vadd.f32 %v803_v40, %v613_v3 }
  0x99   :  { %v805_v47 = vadd.f32 %v804_v43, %v624_v57 }
  0x9b   :  { %v806_v0 = vadd.f32 %v805_v47, %v635_v30 }
  0x9d   :  { %v807_v25 = vadd.f32 %v806_v0, %v646_v48 }
  0x9f   :  { %808 = vadd.xlane.f32.xlu0 %v807_v25 }
 0x12c   :  { %v809_v8 = vpop.xlane.xlu0 %808 }
 0x12d   :  { %v810_v61 = vrot.slane %v809_v8, 4 }
 0x12f   :  { %v811_v9 = vadd.f32 %v810_v61, %v809_v8 }
 0x131   :  { %v812_v12 = vrot.slane %v811_v9, 2 }
 0x133   :  { %v813_v14 = vadd.f32 %v812_v12, %v811_v9 }
 0x135   :  { %v814_v16 = vrot.slane %v813_v14, 1 }
 0x137   :  { %v815_v60 = vadd.f32 %v814_v16, %v813_v14 }
 0x139   :  { %848 = vpush %v815_v60 }
 0x16a   :  { %s849_s0 = spop %848 }
 0x16b   :  { %818 = sst [smem:[#allocation3]] %s849_s0 }
 0x16c   :  { %860 = shalt.err (!%p857_p2)
}
 0x16d   :  { %s863_s2 = smov [#allocation3]  }
 0x16e   :  { %826 = dma.smem_to_hbm %s863_s2, 16, %s2073_s1, [#allocation4]  }
 0x16f   :  { %861 = dma.done.wait [#allocation4], 16  }
 0x170   :  { %862 = vsyncadd [#allocation4], 4294967280 }
 0x171   :  { %830 = sfence }
 0x172   :  { %831 = vsyncpa [#allocation4], 1 }

// kernel: l1_regularization.2
= control target key start
LH: loop header
LB: loop body
LE: loop exit
PB: predicated region body
PF: predicated region fallthrough
CT: control target
= control target key end

     0   :  { %6 = vsyncpa [#allocation4], 0  ;;  %s1875_s0 = inlined_call_operand.vmem [shape: f32[24,8,1024], index: 0, kind: input, shape index: {}]   ;;  %s1876_s1 = inlined_call_operand.hbm [shape: f32[1,1], index: 1, kind: output, shape index: {}]  }
   0x1   :  { %v63_v0 = vld [vmem:[%s1875_s0] sm:$0xff]  ;;  %v64_v2 = vld [vmem:[%s1875_s0 + $0x8] sm:$0xff]  ;;  %v65_v4 = vld [vmem:[%s1875_s0 + $0x10] sm:$0xff]  ;;  %s771_s15 = scalar_lea.hbm %s1876_s1, 16 }
   0x2   :  { %v71_v1 = vld [vmem:[%s1875_s0 + $0x40] sm:$0xff]  ;;  %v72_v3 = vld [vmem:[%s1875_s0 + $0x48] sm:$0xff]  ;;  %v255_v5 = vand.u32 2147483647, %v63_v0  ;;  %v73_v7 = vld [vmem:[%s1875_s0 + $0x50] sm:$0xff]  ;;  %p772_p0 = scmp.ne.s32.totalorder %s1876_s1, %s771_s15  ;;  %p775_p1 = scmp.lt.u32.totalorder %s771_s15, %s1876_s1 }
   0x3   :  { %v263_v6 = vand.u32 2147483647, %v71_v1  ;;  %v79_v8 = vld [vmem:[%s1875_s0 + $0x80] sm:$0xff]  ;;  %v256_v9 = vand.u32 2147483647, %v64_v2  ;;  %v80_v11 = vld [vmem:[%s1875_s0 + $0x88] sm:$0xff] }
   0x4   :  { %v264_v10 = vand.u32 2147483647, %v72_v3  ;;  %v257_v12 = vand.u32 2147483647, %v65_v4  ;;  %v265_v13 = vand.u32 2147483647, %v73_v7  ;;  %p777_p2 = pnand %p775_p1, %p772_p0 }
   0x5   :  { %v271_v14 = vand.u32 2147483647, %v79_v8  ;;  %v455_v15 = vadd.f32 %v263_v6, %v255_v5  ;;  %v81_v16 = vld [vmem:[%s1875_s0 + $0x90] sm:$0xff]  ;;  %v87_v17 = vld [vmem:[%s1875_s0 + $0xc0] sm:$0xff]  ;;  %v272_v18 = vand.u32 2147483647, %v80_v11 }
   0x6   :  { %v478_v19 = vadd.f32 %v264_v10, %v256_v9  ;;  %v88_v20 = vld [vmem:[%s1875_s0 + $0xc8] sm:$0xff]  ;;  %v66_v21 = vld [vmem:[%s1875_s0 + $0x18] sm:$0xff]  ;;  %v67_v22 = vld [vmem:[%s1875_s0 + $0x20] sm:$0xff]  ;;  %v273_v26 = vand.u32 2147483647, %v81_v16  ;;  %v501_v29 = vadd.f32 %v265_v13, %v257_v12 }
   0x7   :  { %v68_v23 = vld [vmem:[%s1875_s0 + $0x28] sm:$0xff]  ;;  %v69_v24 = vld [vmem:[%s1875_s0 + $0x30] sm:$0xff]  ;;  %v74_v25 = vld [vmem:[%s1875_s0 + $0x58] sm:$0xff]  ;;  %v279_v27 = vand.u32 2147483647, %v87_v17  ;;  %v456_v28 = vadd.f32 %v455_v15, %v271_v14 }
   0x8   :  { %v70_v30 = vld [vmem:[%s1875_s0 + $0x38] sm:$0xff]  ;;  %v75_v31 = vld [vmem:[%s1875_s0 + $0x60] sm:$0xff]  ;;  %v89_v32 = vld [vmem:[%s1875_s0 + $0xd0] sm:$0xff]  ;;  %v280_v34 = vand.u32 2147483647, %v88_v20  ;;  %v479_v35 = vadd.f32 %v478_v19, %v272_v18  ;;  %v502_v48 = vadd.f32 %v501_v29, %v273_v26 }
   0x9   :  { %v95_v33 = vld [vmem:[%s1875_s0 + $0x100] sm:$0xff]  ;;  %v76_v36 = vld [vmem:[%s1875_s0 + $0x68] sm:$0xff]  ;;  %v77_v37 = vld [vmem:[%s1875_s0 + $0x70] sm:$0xff]  ;;  %v258_v39 = vand.u32 2147483647, %v66_v21  ;;  %v457_v47 = vadd.f32 %v456_v28, %v279_v27 }
   0xa   :  { %v96_v38 = vld [vmem:[%s1875_s0 + $0x108] sm:$0xff]  ;;  %v259_v40 = vand.u32 2147483647, %v67_v22  ;;  %v260_v41 = vand.u32 2147483647, %v68_v23  ;;  %v78_v43 = vld [vmem:[%s1875_s0 + $0x78] sm:$0xff]  ;;  %v480_v53 = vadd.f32 %v479_v35, %v280_v34 }
   0xb   :  { %v261_v42 = vand.u32 2147483647, %v69_v24  ;;  %v82_v44 = vld [vmem:[%s1875_s0 + $0x98] sm:$0xff]  ;;  %v281_v45 = vand.u32 2147483647, %v89_v32  ;;  %v97_v49 = vld [vmem:[%s1875_s0 + $0x110] sm:$0xff] }
   0xc   :  { %v287_v46 = vand.u32 2147483647, %v95_v33  ;;  %v103_v50 = vld [vmem:[%s1875_s0 + $0x140] sm:$0xff]  ;;  %v266_v51 = vand.u32 2147483647, %v74_v25  ;;  %v104_v55 = vld [vmem:[%s1875_s0 + $0x148] sm:$0xff] }
   0xd   :  { %v288_v52 = vand.u32 2147483647, %v96_v38  ;;  %v83_v54 = vld [vmem:[%s1875_s0 + $0xa0] sm:$0xff]  ;;  %v262_v56 = vand.u32 2147483647, %v70_v30  ;;  %v84_v61 = vld [vmem:[%s1875_s0 + $0xa8] sm:$0xff]  ;;  %v503_v1 = vadd.f32 %v502_v48, %v281_v45 }
   0xe   :  { %v267_v57 = vand.u32 2147483647, %v75_v31  ;;  %v268_v58 = vand.u32 2147483647, %v76_v36  ;;  %v269_v59 = vand.u32 2147483647, %v77_v37  ;;  %v458_v0 = vadd.f32 %v457_v47, %v287_v46 }
   0xf   :  { %v270_v60 = vand.u32 2147483647, %v78_v43  ;;  %v289_v62 = vand.u32 2147483647, %v97_v49  ;;  %v295_v63 = vand.u32 2147483647, %v103_v50  ;;  %v481_v6 = vadd.f32 %v480_v53, %v288_v52 }
  0x10   :  { %v105_v2 = vld [vmem:[%s1875_s0 + $0x150] sm:$0xff]  ;;  %v111_v3 = vld [vmem:[%s1875_s0 + $0x180] sm:$0xff]  ;;  %v274_v4 = vand.u32 2147483647, %v82_v44  ;;  %v296_v5 = vand.u32 2147483647, %v104_v55  ;;  %v524_v7 = vadd.f32 %v266_v51, %v258_v39  ;;  %v547_v11 = vadd.f32 %v267_v57, %v259_v40 }
  0x11   :  { %v85_v8 = vld [vmem:[%s1875_s0 + $0xb0] sm:$0xff]  ;;  %v112_v9 = vld [vmem:[%s1875_s0 + $0x188] sm:$0xff]  ;;  %v275_v10 = vand.u32 2147483647, %v83_v54  ;;  %v86_v12 = vld [vmem:[%s1875_s0 + $0xb8] sm:$0xff]  ;;  %v570_v16 = vadd.f32 %v268_v58, %v260_v41  ;;  %v593_v17 = vadd.f32 %v269_v59, %v261_v42  ;;  %v616_v18 = vadd.f32 %v270_v60, %v262_v56 }
  0x12   :  { %v90_v13 = vld [vmem:[%s1875_s0 + $0xd8] sm:$0xff]  ;;  %v91_v14 = vld [vmem:[%s1875_s0 + $0xe0] sm:$0xff]  ;;  %v276_v15 = vand.u32 2147483647, %v84_v61  ;;  %v92_v19 = vld [vmem:[%s1875_s0 + $0xe8] sm:$0xff]  ;;  %v459_v23 = vadd.f32 %v458_v0, %v295_v63  ;;  %v504_v24 = vadd.f32 %v503_v1, %v289_v62  ;;  %v482_v29 = vadd.f32 %v481_v6, %v296_v5 }
  0x13   :  { %v113_v20 = vld [vmem:[%s1875_s0 + $0x190] sm:$0xff]  ;;  %v297_v21 = vand.u32 2147483647, %v105_v2  ;;  %v303_v22 = vand.u32 2147483647, %v111_v3  ;;  %v119_v25 = vld [vmem:[%s1875_s0 + $0x1c0] sm:$0xff]  ;;  %v525_v30 = vadd.f32 %v524_v7, %v274_v4  ;;  %v548_v34 = vadd.f32 %v547_v11, %v275_v10 }
  0x14   :  { %v120_v26 = vld [vmem:[%s1875_s0 + $0x1c8] sm:$0xff]  ;;  %v277_v27 = vand.u32 2147483647, %v85_v8  ;;  %v304_v28 = vand.u32 2147483647, %v112_v9  ;;  %v93_v35 = vld [vmem:[%s1875_s0 + $0xf0] sm:$0xff]  ;;  %v571_v38 = vadd.f32 %v570_v16, %v276_v15 }
  0x15   :  { %v278_v31 = vand.u32 2147483647, %v86_v12  ;;  %v282_v32 = vand.u32 2147483647, %v90_v13  ;;  %v283_v33 = vand.u32 2147483647, %v91_v14  ;;  %v460_v43 = vadd.f32 %v459_v23, %v303_v22 }
  0x16   :  { %v94_v36 = vld [vmem:[%s1875_s0 + $0xf8] sm:$0xff]  ;;  %v284_v37 = vand.u32 2147483647, %v92_v19  ;;  %v99_v40 = vld [vmem:[%s1875_s0 + $0x120] sm:$0xff]  ;;  %v305_v41 = vand.u32 2147483647, %v113_v20  ;;  %v505_v44 = vadd.f32 %v504_v24, %v297_v21  ;;  %v483_v48 = vadd.f32 %v482_v29, %v304_v28 }
  0x17   :  { %v98_v39 = vld [vmem:[%s1875_s0 + $0x118] sm:$0xff]  ;;  %v311_v42 = vand.u32 2147483647, %v119_v25  ;;  %v100_v45 = vld [vmem:[%s1875_s0 + $0x128] sm:$0xff]  ;;  %v121_v46 = vld [vmem:[%s1875_s0 + $0x1d0] sm:$0xff]  ;;  %v594_v49 = vadd.f32 %v593_v17, %v277_v27  ;;  %v526_v53 = vadd.f32 %v525_v30, %v282_v32  ;;  %v549_v54 = vadd.f32 %v548_v34, %v283_v33 }
  0x18   :  { %v312_v47 = vand.u32 2147483647, %v120_v26  ;;  %v101_v50 = vld [vmem:[%s1875_s0 + $0x130] sm:$0xff]  ;;  %v127_v51 = vld [vmem:[%s1875_s0 + $0x200] sm:$0xff]  ;;  %v285_v52 = vand.u32 2147483647, %v93_v35  ;;  %v617_v55 = vadd.f32 %v616_v18, %v278_v31  ;;  %v572_v59 = vadd.f32 %v571_v38, %v284_v37 }
  0x19   :  { %v286_v56 = vand.u32 2147483647, %v94_v36  ;;  %v290_v57 = vand.u32 2147483647, %v98_v39  ;;  %v291_v58 = vand.u32 2147483647, %v99_v40  ;;  %v461_v0 = vadd.f32 %v460_v43, %v311_v42 }
  0x1a   :  { %v944_v60 = vld [vmem:[%s1875_s0 + $0x138] sm:$0xff]  ;;  %v128_v61 = vld [vmem:[%s1875_s0 + $0x208] sm:$0xff]  ;;  %v292_v62 = vand.u32 2147483647, %v100_v45  ;;  %v313_v63 = vand.u32 2147483647, %v121_v46  ;;  %v506_v1 = vadd.f32 %v505_v44, %v305_v41  ;;  %v484_v6 = vadd.f32 %v483_v48, %v312_v47 }
  0x1b   :  { %v952_v2 = vld [vmem:[%s1875_s0 + $0x158] sm:$0xff]  ;;  %v957_v3 = vld [vmem:[%s1875_s0 + $0x160] sm:$0xff]  ;;  %v962_v4 = vld [vmem:[%s1875_s0 + $0x168] sm:$0xff]  ;;  %v293_v10 = vand.u32 2147483647, %v101_v50  ;;  %v595_v12 = vadd.f32 %v594_v49, %v285_v52  ;;  %v993_v17 = vadd.f32 %v526_v53, %v290_v57  ;;  %v995_v18 = vadd.f32 %v549_v54, %v291_v58 }
  0x1c   :  { %v129_v5 = vld [vmem:[%s1875_s0 + $0x210] sm:$0xff]  ;;  %v135_v8 = vld [vmem:[%s1875_s0 + $0x240] sm:$0xff]  ;;  %v136_v9 = vld [vmem:[%s1875_s0 + $0x248] sm:$0xff]  ;;  %v319_v11 = vand.u32 2147483647, %v127_v51  ;;  %v997_v19 = vadd.f32 %v617_v55, %v286_v56  ;;  %v507_v27 = vadd.f32 %v506_v1, %v313_v63  ;;  %v1021_v28 = vadd.f32 %v572_v59, %v292_v62 }
  0x1d   :  { %v970_v7 = vld [vmem:[%s1875_s0 + $0x170] sm:$0xff]  ;;  %v981_v13 = vld [vmem:[%s1875_s0 + $0x178] sm:$0xff]  ;;  %v991_v15 = vld [vmem:[%s1875_s0 + $0x1a0] sm:$0xff]  ;;  %v320_v16 = vand.u32 2147483647, %v128_v61  ;;  %v1052_v42 = vadd.f32 %v595_v12, %v293_v10 }
  0x1e   :  { %v986_v14 = vld [vmem:[%s1875_s0 + $0x198] sm:$0xff]  ;;  %v1002_v20 = vld [vmem:[%s1875_s0 + $0x1a8] sm:$0xff]  ;;  %v1007_v21 = vld [vmem:[%s1875_s0 + $0x1b0] sm:$0xff]  ;;  %v294_v25 = vand.u32 2147483647, %v944_v60  ;;  %v462_v26 = vadd.f32 %v461_v0, %v319_v11 }
  0x1f   :  { %v1012_v22 = vld [vmem:[%s1875_s0 + $0x250] sm:$0xff]  ;;  %v143_v23 = vld [vmem:[%s1875_s0 + $0x280] sm:$0xff]  ;;  %v144_v24 = vld [vmem:[%s1875_s0 + $0x288] sm:$0xff]  ;;  %v321_v32 = vand.u32 2147483647, %v129_v5  ;;  %v485_v35 = vadd.f32 %v484_v6, %v320_v16 }
  0x20   :  { %v1026_v29 = vld [vmem:[%s1875_s0 + $0x1b8] sm:$0xff]  ;;  %v151_v31 = vld [vmem:[%s1875_s0 + $0x2c0] sm:$0xff]  ;;  %v327_v33 = vand.u32 2147483647, %v135_v8  ;;  %v328_v34 = vand.u32 2147483647, %v136_v9 }
  0x21   :  { %v1031_v30 = vld [vmem:[%s1875_s0 + $0x1d8] sm:$0xff]  ;;  %v1039_v36 = vld [vmem:[%s1875_s0 + $0x1e0] sm:$0xff]  ;;  %v1044_v37 = vld [vmem:[%s1875_s0 + $0x1e8] sm:$0xff]  ;;  %v298_v39 = vand.u32 2147483647, %v952_v2  ;;  %v508_v63 = vadd.f32 %v507_v27, %v321_v32 }
  0x22   :  { %v152_v38 = vld [vmem:[%s1875_s0 + $0x2c8] sm:$0xff]  ;;  %v299_v40 = vand.u32 2147483647, %v957_v3  ;;  %v300_v41 = vand.u32 2147483647, %v962_v4  ;;  %v1057_v43 = vld [vmem:[%s1875_s0 + $0x1f0] sm:$0xff]  ;;  %v463_v49 = vadd.f32 %v462_v26, %v327_v33  ;;  %v486_v55 = vadd.f32 %v485_v35, %v328_v34 }
  0x23   :  { %v1062_v44 = vld [vmem:[%s1875_s0 + $0x1f8] sm:$0xff]  ;;  %v1067_v45 = vld [vmem:[%s1875_s0 + $0x290] sm:$0xff]  ;;  %v301_v46 = vand.u32 2147483647, %v970_v7  ;;  %v302_v47 = vand.u32 2147483647, %v981_v13  ;;  %v1195_v60 = vadd.f32 %v993_v17, %v298_v39 }
  0x24   :  { %v159_v50 = vld [vmem:[%s1875_s0 + $0x300] sm:$0xff]  ;;  %v1078_v51 = vld [vmem:[%s1875_s0 + $0x308] sm:$0xff]  ;;  %v335_v53 = vand.u32 2147483647, %v143_v23  ;;  %v336_v54 = vand.u32 2147483647, %v144_v24  ;;  %v1263_v3 = vadd.f32 %v1021_v28, %v300_v41 }
  0x25   :  { %v1084_v56 = vld [vmem:[%s1875_s0 + $0x218] sm:$0xff]  ;;  %v1089_v57 = vld [vmem:[%s1875_s0 + $0x220] sm:$0xff]  ;;  %v1094_v58 = vld [vmem:[%s1875_s0 + $0x228] sm:$0xff]  ;;  %v329_v62 = vand.u32 2147483647, %v1012_v22 }
  0x26   :  { %v1102_v0 = vld [vmem:[%s1875_s0 + $0x230] sm:$0xff]  ;;  %v1107_v1 = vld [vmem:[%s1875_s0 + $0x238] sm:$0xff]  ;;  %v343_v9 = vand.u32 2147483647, %v151_v31  ;;  %v464_v10 = vadd.f32 %v463_v49, %v335_v53  ;;  %v1119_v11 = vld [vmem:[%s1875_s0 + $0x260] sm:$0xff]  ;;  %v487_v24 = vadd.f32 %v486_v55, %v336_v54 }
  0x27   :  { %v1112_v5 = vld [vmem:[%s1875_s0 + $0x258] sm:$0xff]  ;;  %v1124_v12 = vld [vmem:[%s1875_s0 + $0x268] sm:$0xff]  ;;  %v344_v23 = vand.u32 2147483647, %v152_v38  ;;  %v1131_v26 = vld [vmem:[%s1875_s0 + $0x2d0] sm:$0xff] }
  0x28   :  { %v337_v32 = vand.u32 2147483647, %v1067_v45  ;;  %v465_v33 = vadd.f32 %v464_v10, %v343_v9  ;;  %v1139_v34 = vld [vmem:[%s1875_s0 + $0x270] sm:$0xff]  ;;  %v1144_v35 = vld [vmem:[%s1875_s0 + $0x278] sm:$0xff]  ;;  %v167_v45 = vld [vmem:[%s1875_s0 + $0x340] sm:$0xff]  ;;  %v509_v9 = vadd.f32 %v508_v63, %v329_v62  ;;  %v619_v63 = vadd.f32 %v997_v19, %v294_v25 }
  0x29   :  { %v1149_v38 = vld [vmem:[%s1875_s0 + $0x298] sm:$0xff]  ;;  %v168_v49 = vld [vmem:[%s1875_s0 + $0x348] sm:$0xff]  ;;  %v351_v53 = vand.u32 2147483647, %v159_v50  ;;  %v352_v54 = vand.u32 2147483647, %v1078_v51  ;;  %v488_v55 = vadd.f32 %v487_v24, %v344_v23 }
  0x2a   :  { %v1161_v10 = vld [vmem:[%s1875_s0 + $0x2a0] sm:$0xff]  ;;  %v1166_v31 = vld [vmem:[%s1875_s0 + $0x2a8] sm:$0xff]  ;;  %v1171_v27 = vld [vmem:[%s1875_s0 + $0x2b0] sm:$0xff]  ;;  %v359_v16 = vand.u32 2147483647, %v167_v45  ;;  %v510_v25 = vadd.f32 %v509_v9, %v337_v32  ;;  %v1330_v7 = vadd.f32 %v619_v63, %v302_v47 }
  0x2b   :  { %v1182_v23 = vld [vmem:[%s1875_s0 + $0x2b8] sm:$0xff]  ;;  %v1200_v19 = vld [vmem:[%s1875_s0 + $0x310] sm:$0xff]  ;;  %v466_v50 = vadd.f32 %v465_v33, %v351_v53  ;;  %v1207_v51 = vld [vmem:[%s1875_s0 + $0x2e0] sm:$0xff]  ;;  %v345_v45 = vand.u32 2147483647, %v1131_v26  ;;  %v489_v22 = vadd.f32 %v488_v55, %v352_v54  ;;  %v551_v54 = vadd.f32 %v995_v18, %v299_v40 }
  0x2c   :  { %1908 = vst [vmem:[#allocation6_spill] sm:$0xff] %v1182_v23  ;;  %v1187_v24 = vld [vmem:[%s1875_s0 + $0x2d8] sm:$0xff]  ;;  %v1212_v2 = vld [vmem:[%s1875_s0 + $0x2e8] sm:$0xff]  ;;  %v1217_v17 = vld [vmem:[%s1875_s0 + $0x2f0] sm:$0xff]  ;;  %v360_v53 = vand.u32 2147483647, %v168_v49 }
  0x2d   :  { %1909 = vst [vmem:[#allocation7_spill] sm:$0xff] %v1212_v2  ;;  %1910 = vst [vmem:[#allocation8_spill] sm:$0xff] %v1217_v17  ;;  %v175_v39 = vld [vmem:[%s1875_s0 + $0x380] sm:$0xff]  ;;  %v176_v33 = vld [vmem:[%s1875_s0 + $0x388] sm:$0xff]  ;;  %v467_v26 = vadd.f32 %v466_v50, %v359_v16  ;;  %v353_v50 = vand.u32 2147483647, %v1200_v19  ;;  %v511_v61 = vadd.f32 %v510_v25, %v345_v45 }
  0x2e   :  { %v1229_v62 = vld [vmem:[%s1875_s0 + $0x2f8] sm:$0xff]  ;;  %v1239_v6 = vld [vmem:[%s1875_s0 + $0x320] sm:$0xff]  ;;  %v1250_v55 = vld [vmem:[%s1875_s0 + $0x328] sm:$0xff]  ;;  %v367_v59 = vand.u32 2147483647, %v175_v39  ;;  %v490_v40 = vadd.f32 %v489_v22, %v360_v53 }
  0x2f   :  { %1911 = vst [vmem:[#allocation9_spill] sm:$0xff] %v1229_v62  ;;  %v1234_v8 = vld [vmem:[%s1875_s0 + $0x318] sm:$0xff]  ;;  %1912 = vst [vmem:[#allocation10_spill] sm:$0xff] %v1250_v55  ;;  %v1255_v9 = vld [vmem:[%s1875_s0 + $0x330] sm:$0xff]  ;;  %v368_v39 = vand.u32 2147483647, %v176_v33  ;;  %v597_v33 = vadd.f32 %v1052_v42, %v301_v46  ;;  %v512_v46 = vadd.f32 %v511_v61, %v353_v50 }
  0x30   :  { %1913 = vst [vmem:[#allocation11_spill] sm:$0xff] %v1255_v9  ;;  %v1268_v18 = vld [vmem:[%s1875_s0 + $0x350] sm:$0xff]  ;;  %v1275_v32 = vld [vmem:[%s1875_s0 + $0x338] sm:$0xff]  ;;  %v1285_v28 = vld [vmem:[%s1875_s0 + $0x360] sm:$0xff]  ;;  %v468_v2 = vadd.f32 %v467_v26, %v367_v59 }
  0x31   :  { %1914 = vst [vmem:[#allocation12_spill] sm:$0xff] %v1275_v32  ;;  %v1280_v4 = vld [vmem:[%s1875_s0 + $0x358] sm:$0xff]  ;;  %1916 = vst [vmem:[#allocation14_spill] sm:$0xff] %v1285_v28  ;;  %v183_v41 = vld [vmem:[%s1875_s0 + $0x3c0] sm:$0xff]  ;;  %v361_v26 = vand.u32 2147483647, %v1268_v18  ;;  %v491_v23 = vadd.f32 %v490_v40, %v368_v39 }
  0x32   :  { %1915 = vst [vmem:[#allocation13_spill] sm:$0xff] %v1280_v4  ;;  %v184_v16 = vld [vmem:[%s1875_s0 + $0x3c8] sm:$0xff]  ;;  %v1302_v52 = vld [vmem:[%s1875_s0 + $0x370] sm:$0xff]  ;;  %v1307_v48 = vld [vmem:[%s1875_s0 + $0x378] sm:$0xff]  ;;  %v375_v17 = vand.u32 2147483647, %v183_v41 }
  0x33   :  { %v1297_v49 = vld [vmem:[%s1875_s0 + $0x368] sm:$0xff]  ;;  %1917 = vst [vmem:[#allocation15_spill] sm:$0xff] %v1307_v48  ;;  %v1318_v45 = vld [vmem:[%s1875_s0 + $0x390] sm:$0xff]  ;;  %v1323_v53 = vld [vmem:[%s1875_s0 + $0x398] sm:$0xff]  ;;  %v376_v41 = vand.u32 2147483647, %v184_v16  ;;  %v513_v61 = vadd.f32 %v512_v46, %v361_v26 }
  0x34   :  { %1918 = vst [vmem:[#allocation16_spill] sm:$0xff] %v1323_v53  ;;  %v1335_v42 = vld [vmem:[%s1875_s0 + $0x3a0] sm:$0xff]  ;;  %v1342_v19 = vld [vmem:[%s1875_s0 + $0x3a8] sm:$0xff]  ;;  %v1347_v13 = vld [vmem:[%s1875_s0 + $0x3b0] sm:$0xff]  ;;  %v1923_v16 = vand.u32 2147483647, %v986_v14  ;;  %v469_v55 = vadd.f32 %v468_v2, %v375_v17 }
  0x35   :  { %1919 = vst [vmem:[#allocation17_spill] sm:$0xff] %v1335_v42  ;;  %1920 = vst [vmem:[#allocation18_spill] sm:$0xff] %v1342_v19  ;;  %v1352_v47 = vld [vmem:[%s1875_s0 + $0x3b8] sm:$0xff]  ;;  %v191_v63 = vld [vmem:[%s1875_s0 + $0x400] sm:$0xff]  ;;  %v1926_v14 = vand.u32 2147483647, %v991_v15 }
  0x36   :  { %1921 = vst [vmem:[#allocation19_spill] sm:$0xff] %v1347_v13  ;;  %1922 = vst [vmem:[#allocation20_spill] sm:$0xff] %v1352_v47  ;;  %v192_v59 = vld [vmem:[%s1875_s0 + $0x408] sm:$0xff]  ;;  %v1364_v25 = vld [vmem:[%s1875_s0 + $0x3d0] sm:$0xff]  ;;  %v529_v50 = vadd.f32 %v1195_v60, %v1923_v16  ;;  %v369_v16 = vand.u32 2147483647, %v1318_v45 }
  0x37   :  { %v1369_v22 = vld [vmem:[%s1875_s0 + $0x3d8] sm:$0xff]  ;;  %v1374_v62 = vld [vmem:[%s1875_s0 + $0x3e0] sm:$0xff]  ;;  %v1385_v39 = vld [vmem:[%s1875_s0 + $0x3e8] sm:$0xff]  ;;  %v1397_v32 = vadd.f32 %v551_v54, %v1926_v14  ;;  %v383_v4 = vand.u32 2147483647, %v191_v63  ;;  %v492_v14 = vadd.f32 %v491_v23, %v376_v41 }
  0x38   :  { %1924 = vst [vmem:[#allocation21_spill] sm:$0xff] %v1385_v39  ;;  %v1390_v9 = vld [vmem:[%s1875_s0 + $0x3f0] sm:$0xff]  ;;  %v1402_v60 = vld [vmem:[%s1875_s0 + $0x3f8] sm:$0xff]  ;;  %v1419_v54 = vld [vmem:[%s1875_s0 + $0x420] sm:$0xff]  ;;  %v384_v63 = vand.u32 2147483647, %v192_v59 }
  0x39   :  { %1925 = vst [vmem:[#allocation22_spill] sm:$0xff] %v1390_v9  ;;  %1927 = vst [vmem:[#allocation23_spill] sm:$0xff] %v1402_v60  ;;  %v1409_v40 = vld [vmem:[%s1875_s0 + $0x410] sm:$0xff]  ;;  %v1414_v15 = vld [vmem:[%s1875_s0 + $0x418] sm:$0xff]  ;;  %v1932_v59 = vand.u32 2147483647, %v1002_v20  ;;  %v470_v53 = vadd.f32 %v469_v55, %v383_v4 }
  0x3a   :  { %1928 = vst [vmem:[#allocation24_spill] sm:$0xff] %v1414_v15  ;;  %1929 = vst [vmem:[#allocation25_spill] sm:$0xff] %v1419_v54  ;;  %v199_v45 = vld [vmem:[%s1875_s0 + $0x440] sm:$0xff]  ;;  %v200_v2 = vld [vmem:[%s1875_s0 + $0x448] sm:$0xff]  ;;  %v377_v17 = vand.u32 2147483647, %v1364_v25  ;;  %v493_v13 = vadd.f32 %v492_v14, %v384_v63 }
  0x3b   :  { %v1431_v28 = vld [vmem:[%s1875_s0 + $0x428] sm:$0xff]  ;;  %v1436_v18 = vld [vmem:[%s1875_s0 + $0x430] sm:$0xff]  ;;  %v1441_v48 = vld [vmem:[%s1875_s0 + $0x438] sm:$0xff]  ;;  %v575_v26 = vadd.f32 %v1263_v3, %v1932_v59  ;;  %v1934_v20 = vand.u32 2147483647, %v1007_v21  ;;  %v514_v59 = vadd.f32 %v513_v61, %v369_v16 }
  0x3c   :  { %1930 = vst [vmem:[#allocation26_spill] sm:$0xff] %v1431_v28  ;;  %1931 = vst [vmem:[#allocation27_spill] sm:$0xff] %v1441_v48  ;;  %v1452_v41 = vld [vmem:[%s1875_s0 + $0x450] sm:$0xff]  ;;  %v1457_v42 = vld [vmem:[%s1875_s0 + $0x458] sm:$0xff]  ;;  %v391_v19 = vand.u32 2147483647, %v199_v45 }
  0x3d   :  { %1933 = vst [vmem:[#allocation28_spill] sm:$0xff] %v1457_v42  ;;  %v1464_v47 = vadd.f32 %v597_v33, %v1934_v20  ;;  %v1469_v3 = vld [vmem:[%s1875_s0 + $0x460] sm:$0xff]  ;;  %v1476_v25 = vld [vmem:[%s1875_s0 + $0x468] sm:$0xff]  ;;  %v1481_v21 = vld [vmem:[%s1875_s0 + $0x470] sm:$0xff]  ;;  %v392_v20 = vand.u32 2147483647, %v200_v2 }
  0x3e   :  { %1935 = vst [vmem:[#allocation29_spill] sm:$0xff] %v1469_v3  ;;  %1936 = vst [vmem:[#allocation30_spill] sm:$0xff] %v1476_v25  ;;  %v1486_v33 = vld [vmem:[%s1875_s0 + $0x478] sm:$0xff]  ;;  %v207_v45 = vld [vmem:[%s1875_s0 + $0x480] sm:$0xff]  ;;  %v385_v4 = vand.u32 2147483647, %v1409_v40 }
  0x3f   :  { %1937 = vst [vmem:[#allocation31_spill] sm:$0xff] %v1481_v21  ;;  %1938 = vst [vmem:[#allocation32_spill] sm:$0xff] %v1486_v33  ;;  %v208_v55 = vld [vmem:[%s1875_s0 + $0x488] sm:$0xff]  ;;  %v1498_v46 = vld [vmem:[%s1875_s0 + $0x490] sm:$0xff]  ;;  %v1939_v16 = vand.u32 2147483647, %v1026_v29  ;;  %v471_v29 = vadd.f32 %v470_v53, %v391_v19  ;;  %v515_v19 = vadd.f32 %v514_v59, %v377_v17 }
  0x40   :  { %v1503_v23 = vld [vmem:[%s1875_s0 + $0x498] sm:$0xff]  ;;  %v1508_v9 = vld [vmem:[%s1875_s0 + $0x4a0] sm:$0xff]  ;;  %v1521_v14 = vld [vmem:[%s1875_s0 + $0x4a8] sm:$0xff]  ;;  %v393_v39 = vand.u32 2147483647, %v1452_v41 }
  0x41   :  { %v1516_v63 = vadd.f32 %v1330_v7, %v1939_v16  ;;  %1940 = vst [vmem:[#allocation33_spill] sm:$0xff] %v1521_v14  ;;  %v1526_v60 = vld [vmem:[%s1875_s0 + $0x4b0] sm:$0xff]  ;;  %v215_v40 = vld [vmem:[%s1875_s0 + $0x4c0] sm:$0xff]  ;;  %v1942_v16 = vand.u32 2147483647, %v1031_v30  ;;  %v1539_v54 = vld [vmem:[%s1875_s0 + $0x4b8] sm:$0xff] }
  0x42   :  { %1941 = vst [vmem:[#allocation34_spill] sm:$0xff] %v1526_v60  ;;  %1943 = vst [vmem:[#allocation35_spill] sm:$0xff] %v1539_v54  ;;  %v216_v15 = vld [vmem:[%s1875_s0 + $0x4c8] sm:$0xff]  ;;  %v399_v28 = vand.u32 2147483647, %v207_v45  ;;  %v1549_v30 = vld [vmem:[%s1875_s0 + $0x4d0] sm:$0xff]  ;;  %v494_v45 = vadd.f32 %v493_v13, %v392_v20 }
  0x43   :  { %v530_v2 = vadd.f32 %v529_v50, %v1942_v16  ;;  %v1554_v50 = vld [vmem:[%s1875_s0 + $0x4d8] sm:$0xff]  ;;  %v1559_v16 = vld [vmem:[%s1875_s0 + $0x4e0] sm:$0xff]  ;;  %v400_v7 = vand.u32 2147483647, %v208_v55  ;;  %v1565_v53 = vld [vmem:[%s1875_s0 + $0x4e8] sm:$0xff] }
  0x44   :  { %1944 = vst [vmem:[#allocation36_spill] sm:$0xff] %v1554_v50  ;;  %v1570_v61 = vld [vmem:[%s1875_s0 + $0x4f0] sm:$0xff]  ;;  %v1575_v48 = vld [vmem:[%s1875_s0 + $0x4f8] sm:$0xff]  ;;  %v1945_v59 = vand.u32 2147483647, %v1039_v36  ;;  %v223_v20 = vld [vmem:[%s1875_s0 + $0x500] sm:$0xff]  ;;  %v472_v21 = vadd.f32 %v471_v29, %v399_v28 }
  0x45   :  { %v224_v3 = vld [vmem:[%s1875_s0 + $0x508] sm:$0xff]  ;;  %v401_v42 = vand.u32 2147483647, %v1498_v46  ;;  %v1946_v17 = vand.u32 2147483647, %v1044_v37  ;;  %v1599_v25 = vld [vmem:[%s1875_s0 + $0x510] sm:$0xff] }
  0x46   :  { %v553_v55 = vadd.f32 %v1397_v32, %v1945_v59  ;;  %v407_v59 = vand.u32 2147483647, %v215_v40  ;;  %v1604_v46 = vld [vmem:[%s1875_s0 + $0x518] sm:$0xff]  ;;  %v408_v37 = vand.u32 2147483647, %v216_v15  ;;  %v1610_v40 = vld [vmem:[%s1875_s0 + $0x520] sm:$0xff] }
  0x47   :  { %v576_v33 = vadd.f32 %v575_v26, %v1946_v17  ;;  %v495_v26 = vadd.f32 %v494_v45, %v400_v7  ;;  %v516_v17 = vadd.f32 %v515_v19, %v385_v4  ;;  %v1615_v28 = vld [vmem:[%s1875_s0 + $0x528] sm:$0xff]  ;;  %v1620_v29 = vld [vmem:[%s1875_s0 + $0x530] sm:$0xff]  ;;  %v409_v13 = vand.u32 2147483647, %v1549_v30 }
  0x48   :  { %v1947_v7 = vand.u32 2147483647, %v1057_v43  ;;  %v412_v19 = vand.u32 2147483647, %v1565_v53  ;;  %v413_v32 = vand.u32 2147483647, %v1570_v61  ;;  %v473_v14 = vadd.f32 %v472_v21, %v407_v59 }
  0x49   :  { %v415_v41 = vand.u32 2147483647, %v223_v20  ;;  %v416_v54 = vand.u32 2147483647, %v224_v3  ;;  %v417_v60 = vand.u32 2147483647, %v1599_v25  ;;  %v496_v15 = vadd.f32 %v495_v26, %v408_v37 }
  0x4a   :  { %v599_v45 = vadd.f32 %v1464_v47, %v1947_v7  ;;  %v418_v30 = vand.u32 2147483647, %v1604_v46  ;;  %v517_v50 = vadd.f32 %v516_v17, %v393_v39  ;;  %v1948_v4 = vand.u32 2147483647, %v1084_v56  ;;  %v1638_v47 = vld [vmem:[%s1875_s0 + $0x538] sm:$0xff]  ;;  %v252_v53 = vld [vmem:[%s1875_s0 + $0x5e8] sm:$0xff] }
  0x4b   :  { %v1949_v7 = vand.u32 2147483647, %v1089_v57  ;;  %v1950_v3 = vand.u32 2147483647, %v1094_v58  ;;  %v1951_v25 = vand.u32 2147483647, %v1102_v0 }
  0x4c   :  { %v531_v43 = vadd.f32 %v530_v2, %v1948_v4  ;;  %v1952_v59 = vand.u32 2147483647, %v1062_v44  ;;  %v419_v56 = vand.u32 2147483647, %v1610_v40  ;;  %v420_v2 = vand.u32 2147483647, %v1615_v28 }
  0x4d   :  { %v554_v36 = vadd.f32 %v553_v55, %v1949_v7  ;;  %v577_v20 = vadd.f32 %v576_v33, %v1950_v3  ;;  %v600_v21 = vadd.f32 %v599_v45, %v1951_v25  ;;  %v421_v37 = vand.u32 2147483647, %v1620_v29  ;;  %v231_v58 = vld [vmem:[%s1875_s0 + $0x540] sm:$0xff]  ;;  %v232_v0 = vld [vmem:[%s1875_s0 + $0x548] sm:$0xff]  ;;  %v253_v40 = vld [vmem:[%s1875_s0 + $0x5f0] sm:$0xff] }
  0x4e   :  { %v622_v39 = vadd.f32 %v1516_v63, %v1952_v59  ;;  %v1953_v26 = vand.u32 2147483647, %v1112_v5  ;;  %v1954_v44 = vand.u32 2147483647, %v1119_v11  ;;  %v1955_v63 = vand.u32 2147483647, %v1124_v12 }
  0x4f   :  { %v1956_v17 = vand.u32 2147483647, %v1139_v34  ;;  %v1957_v5 = vand.u32 2147483647, %v1107_v1  ;;  %v474_v7 = vadd.f32 %v473_v14, %v415_v41  ;;  %v518_v3 = vadd.f32 %v517_v50, %v401_v42  ;;  %v233_v11 = vld [vmem:[%s1875_s0 + $0x550] sm:$0xff]  ;;  %v1677_v12 = vld [vmem:[%s1875_s0 + $0x558] sm:$0xff] }
  0x50   :  { %v532_v57 = vadd.f32 %v531_v43, %v1953_v26  ;;  %v555_v33 = vadd.f32 %v554_v36, %v1954_v44  ;;  %v578_v55 = vadd.f32 %v577_v20, %v1955_v63  ;;  %v422_v43 = vand.u32 2147483647, %v1638_v47 }
  0x51   :  { %v601_v4 = vadd.f32 %v600_v21, %v1956_v17  ;;  %v623_v45 = vadd.f32 %v622_v39, %v1957_v5  ;;  %v1958_v25 = vand.u32 2147483647, %v1149_v38  ;;  %v1959_v34 = vand.u32 2147483647, %v1161_v10  ;;  %v1692_v10 = vld [vmem:[%s1875_s0 + $0x560] sm:$0xff] }
  0x52   :  { %v1960_v36 = vand.u32 2147483647, %v1166_v31  ;;  %v1961_v42 = vand.u32 2147483647, %v1171_v27  ;;  %v1962_v38 = vand.u32 2147483647, %v1144_v35  ;;  %v497_v39 = vadd.f32 %v496_v15, %v416_v54 }
  0x53   :  { %v533_v59 = vadd.f32 %v532_v57, %v1958_v25  ;;  %v556_v1 = vadd.f32 %v555_v33, %v1959_v34  ;;  %v423_v41 = vand.u32 2147483647, %v231_v58  ;;  %v424_v21 = vand.u32 2147483647, %v232_v0  ;;  %v239_v31 = vld [vmem:[%s1875_s0 + $0x580] sm:$0xff]  ;;  %v1965_v35 = vld [vmem:[#allocation7_spill] sm:$0xff] }
  0x54   :  { %v579_v20 = vadd.f32 %v578_v55, %v1960_v36  ;;  %v602_v14 = vadd.f32 %v601_v4, %v1961_v42  ;;  %v624_v50 = vadd.f32 %v623_v45, %v1962_v38  ;;  %v1963_v26 = vand.u32 2147483647, %v1187_v24  ;;  %v1967_v0 = vld [vmem:[#allocation8_spill] sm:$0xff]  ;;  %v1969_v24 = vld [vmem:[#allocation6_spill] sm:$0xff]  ;;  %v1975_v42 = vld [vmem:[#allocation11_spill] sm:$0xff] }
  0x55   :  { %v1964_v27 = vand.u32 2147483647, %v1207_v51  ;;  %v1966_v33 = vand.u32 2147483647, %v1965_v35  ;;  %v1968_v54 = vand.u32 2147483647, %v1967_v0  ;;  %v519_v5 = vadd.f32 %v518_v3, %v409_v13 }
  0x56   :  { %v534_v57 = vadd.f32 %v533_v59, %v1963_v26  ;;  %v1970_v63 = vand.u32 2147483647, %v1969_v24  ;;  %v425_v17 = vand.u32 2147483647, %v233_v11  ;;  %v426_v4 = vand.u32 2147483647, %v1677_v12 }
  0x57   :  { %v557_v44 = vadd.f32 %v556_v1, %v1964_v27  ;;  %v580_v58 = vadd.f32 %v579_v20, %v1966_v33  ;;  %v603_v15 = vadd.f32 %v602_v14, %v1968_v54  ;;  %v1971_v45 = vand.u32 2147483647, %v1234_v8  ;;  %v240_v51 = vld [vmem:[%s1875_s0 + $0x588] sm:$0xff]  ;;  %v1973_v1 = vld [vmem:[#allocation10_spill] sm:$0xff]  ;;  %v1977_v11 = vld [vmem:[#allocation9_spill] sm:$0xff] }
  0x58   :  { %v625_v55 = vadd.f32 %v624_v50, %v1970_v63  ;;  %v1972_v59 = vand.u32 2147483647, %v1239_v6  ;;  %v1974_v36 = vand.u32 2147483647, %v1973_v1  ;;  %v1976_v14 = vand.u32 2147483647, %v1975_v42 }
  0x59   :  { %v535_v25 = vadd.f32 %v534_v57, %v1971_v45  ;;  %v1978_v50 = vand.u32 2147483647, %v1977_v11  ;;  %v427_v13 = vand.u32 2147483647, %v1692_v10  ;;  %v431_v8 = vand.u32 2147483647, %v239_v31 }
  0x5a   :  { %v558_v34 = vadd.f32 %v557_v44, %v1972_v59  ;;  %v581_v20 = vadd.f32 %v580_v58, %v1974_v36  ;;  %v604_v38 = vadd.f32 %v603_v15, %v1976_v14  ;;  %v475_v3 = vadd.f32 %v474_v7, %v423_v41  ;;  %v1979_v57 = vld [vmem:[#allocation13_spill] sm:$0xff]  ;;  %v241_v6 = vld [vmem:[%s1875_s0 + $0x590] sm:$0xff]  ;;  %v247_v44 = vld [vmem:[%s1875_s0 + $0x5c0] sm:$0xff] }
  0x5b   :  { %v626_v26 = vadd.f32 %v625_v55, %v1978_v50  ;;  %v1980_v27 = vand.u32 2147483647, %v1979_v57  ;;  %v1981_v33 = vld [vmem:[#allocation14_spill] sm:$0xff]  ;;  %v1983_v54 = vand.u32 2147483647, %v1297_v49  ;;  %v1985_v41 = vld [vmem:[#allocation12_spill] sm:$0xff]  ;;  %v498_v45 = vadd.f32 %v497_v39, %v424_v21 }
  0x5c   :  { %v1982_v58 = vand.u32 2147483647, %v1981_v33  ;;  %v1984_v31 = vand.u32 2147483647, %v1302_v52  ;;  %v1986_v24 = vand.u32 2147483647, %v1985_v41 }
  0x5d   :  { %v536_v35 = vadd.f32 %v535_v25, %v1980_v27  ;;  %v582_v15 = vadd.f32 %v581_v20, %v1983_v54  ;;  %v432_v55 = vand.u32 2147483647, %v240_v51  ;;  %v520_v25 = vadd.f32 %v519_v5, %v417_v60  ;;  %v1987_v59 = vld [vmem:[#allocation16_spill] sm:$0xff]  ;;  %v248_v42 = vld [vmem:[%s1875_s0 + $0x5c8] sm:$0xff]  ;;  %v1991_v20 = vld [vmem:[#allocation18_spill] sm:$0xff] }
  0x5e   :  { %v559_v0 = vadd.f32 %v558_v34, %v1982_v58  ;;  %v605_v7 = vadd.f32 %v604_v38, %v1984_v31  ;;  %v627_v63 = vadd.f32 %v626_v26, %v1986_v24  ;;  %v1988_v1 = vand.u32 2147483647, %v1987_v59  ;;  %v1989_v34 = vld [vmem:[#allocation17_spill] sm:$0xff]  ;;  %v1993_v38 = vld [vmem:[#allocation19_spill] sm:$0xff]  ;;  %v1759_v58 = vld [vmem:[%s1875_s0 + $0x570] sm:$0xff] }
  0x5f   :  { %v1990_v14 = vand.u32 2147483647, %v1989_v34  ;;  %v1992_v11 = vand.u32 2147483647, %v1991_v20  ;;  %v1994_v50 = vand.u32 2147483647, %v1993_v38  ;;  %v476_v5 = vadd.f32 %v475_v3, %v431_v8 }
  0x60   :  { %v537_v36 = vadd.f32 %v536_v35, %v1988_v1  ;;  %v1995_v26 = vld [vmem:[#allocation15_spill] sm:$0xff]  ;;  %v433_v60 = vand.u32 2147483647, %v241_v6  ;;  %v439_v39 = vand.u32 2147483647, %v247_v44  ;;  %v1999_v3 = vld [vmem:[#allocation21_spill] sm:$0xff]  ;;  %v499_v59 = vadd.f32 %v498_v45, %v432_v55 }
  0x61   :  { %v560_v49 = vadd.f32 %v559_v0, %v1990_v14  ;;  %v583_v52 = vadd.f32 %v582_v15, %v1992_v11  ;;  %v606_v57 = vadd.f32 %v605_v7, %v1994_v50  ;;  %v1996_v51 = vand.u32 2147483647, %v1995_v26  ;;  %v1754_v33 = vld [vmem:[%s1875_s0 + $0x568] sm:$0xff]  ;;  %v249_v0 = vld [vmem:[%s1875_s0 + $0x5d0] sm:$0xff]  ;;  %v2001_v54 = vld [vmem:[#allocation22_spill] sm:$0xff] }
  0x62   :  { %v1997_v27 = vand.u32 2147483647, %v1369_v22  ;;  %v1998_v6 = vand.u32 2147483647, %v1374_v62  ;;  %v2000_v22 = vand.u32 2147483647, %v1999_v3  ;;  %v521_v1 = vadd.f32 %v520_v25, %v425_v17 }
  0x63   :  { %v628_v21 = vadd.f32 %v627_v63, %v1996_v51  ;;  %v2002_v15 = vand.u32 2147483647, %v2001_v54  ;;  %v2003_v7 = vld [vmem:[#allocation20_spill] sm:$0xff]  ;;  %v440_v63 = vand.u32 2147483647, %v248_v42  ;;  %v2007_v20 = vld [vmem:[#allocation25_spill] sm:$0xff] }
  0x64   :  { %v538_v35 = vadd.f32 %v537_v36, %v1997_v27  ;;  %v561_v8 = vadd.f32 %v560_v49, %v1998_v6  ;;  %v584_v44 = vadd.f32 %v583_v52, %v2000_v22  ;;  %v2004_v41 = vand.u32 2147483647, %v2003_v7  ;;  %v2005_v36 = vld [vmem:[#allocation24_spill] sm:$0xff]  ;;  %v2009_v62 = vld [vmem:[#allocation26_spill] sm:$0xff]  ;;  %v2012_v51 = vld [vmem:[#allocation23_spill] sm:$0xff] }
  0x65   :  { %v607_v31 = vadd.f32 %v606_v57, %v2002_v15  ;;  %v2006_v34 = vand.u32 2147483647, %v2005_v36  ;;  %v2008_v11 = vand.u32 2147483647, %v2007_v20  ;;  %v2010_v49 = vand.u32 2147483647, %v2009_v62 }
  0x66   :  { %v629_v24 = vadd.f32 %v628_v21, %v2004_v41  ;;  %v2011_v52 = vand.u32 2147483647, %v1436_v18  ;;  %v2013_v57 = vand.u32 2147483647, %v2012_v51  ;;  %v428_v21 = vand.u32 2147483647, %v1754_v33 }
  0x67   :  { %v539_v14 = vadd.f32 %v538_v35, %v2006_v34  ;;  %v562_v38 = vadd.f32 %v561_v8, %v2008_v11  ;;  %v585_v50 = vadd.f32 %v584_v44, %v2010_v49  ;;  %v429_v55 = vand.u32 2147483647, %v1759_v58  ;;  %v2014_v45 = vld [vmem:[#allocation28_spill] sm:$0xff]  ;;  %v238_v35 = vld [vmem:[%s1875_s0 + $0x578] sm:$0xff]  ;;  %v243_v6 = vld [vmem:[%s1875_s0 + $0x5a0] sm:$0xff] }
  0x68   :  { %v608_v26 = vadd.f32 %v607_v31, %v2011_v52  ;;  %v630_v27 = vadd.f32 %v629_v24, %v2013_v57  ;;  %v441_v17 = vand.u32 2147483647, %v249_v0  ;;  %v2015_v25 = vand.u32 2147483647, %v2014_v45  ;;  %v242_v18 = vld [vmem:[%s1875_s0 + $0x598] sm:$0xff]  ;;  %v2018_v58 = vld [vmem:[#allocation30_spill] sm:$0xff] }
  0x69   :  { %v2016_v8 = vld [vmem:[#allocation29_spill] sm:$0xff]  ;;  %v2019_v0 = vand.u32 2147483647, %v2018_v58  ;;  %v2020_v44 = vld [vmem:[#allocation31_spill] sm:$0xff]  ;;  %v477_v24 = vadd.f32 %v476_v5, %v439_v39  ;;  %v500_v36 = vadd.f32 %v499_v59, %v440_v63  ;;  %v522_v34 = vadd.f32 %v521_v1, %v433_v60  ;;  %v2032_v59 = vld [vmem:[#allocation36_spill] sm:$0xff] }
  0x6a   :  { %v540_v42 = vadd.f32 %v539_v14, %v2015_v25  ;;  %v2017_v33 = vand.u32 2147483647, %v2016_v8  ;;  %v2021_v54 = vand.u32 2147483647, %v2020_v44  ;;  %v2022_v31 = vld [vmem:[#allocation27_spill] sm:$0xff]  ;;  %v2026_v49 = vld [vmem:[#allocation33_spill] sm:$0xff] }
  0x6b   :  { %v586_v22 = vadd.f32 %v585_v50, %v2019_v0  ;;  %v2023_v7 = vand.u32 2147483647, %v2022_v31  ;;  %v2024_v14 = vand.u32 2147483647, %v1503_v23  ;;  %v244_v11 = vld [vmem:[%s1875_s0 + $0x5a8] sm:$0xff]  ;;  %v250_v25 = vld [vmem:[%s1875_s0 + $0x5d8] sm:$0xff] }
  0x6c   :  { %v563_v3 = vadd.f32 %v562_v38, %v2017_v33  ;;  %v609_v15 = vadd.f32 %v608_v26, %v2021_v54  ;;  %v2025_v38 = vand.u32 2147483647, %v1508_v9  ;;  %v2027_v50 = vand.u32 2147483647, %v2026_v49  ;;  %v2028_v26 = vld [vmem:[#allocation34_spill] sm:$0xff]  ;;  %v245_v9 = vld [vmem:[%s1875_s0 + $0x5b0] sm:$0xff] }
  0x6d   :  { %v631_v41 = vadd.f32 %v630_v27, %v2023_v7  ;;  %v541_v20 = vadd.f32 %v540_v42, %v2024_v14  ;;  %v2029_v51 = vand.u32 2147483647, %v2028_v26  ;;  %v2030_v27 = vld [vmem:[#allocation32_spill] sm:$0xff]  ;;  %v430_v60 = vand.u32 2147483647, %v238_v35  ;;  %v251_v42 = vld [vmem:[%s1875_s0 + $0x5e0] sm:$0xff] }
  0x6e   :  { %v564_v62 = vadd.f32 %v563_v3, %v2025_v38  ;;  %v587_v52 = vadd.f32 %v586_v22, %v2027_v50  ;;  %v2031_v39 = vand.u32 2147483647, %v2030_v27  ;;  %v434_v63 = vand.u32 2147483647, %v242_v18  ;;  %v2035_v33 = vld [vmem:[#allocation35_spill] sm:$0xff]  ;;  %v254_v12 = vld [vmem:[%s1875_s0 + $0x5f8] sm:$0xff] }
  0x6f   :  { %v610_v57 = vadd.f32 %v609_v15, %v2029_v51  ;;  %v435_v23 = vand.u32 2147483647, %v243_v6  ;;  %v2033_v1 = vand.u32 2147483647, %v2032_v59  ;;  %v2034_v8 = vand.u32 2147483647, %v1559_v16 }
  0x70   :  { %v632_v5 = vadd.f32 %v631_v41, %v2031_v39  ;;  %v588_v18 = vadd.f32 %v587_v52, %v412_v19  ;;  %v2036_v3 = vand.u32 2147483647, %v2035_v33  ;;  %v436_v0 = vand.u32 2147483647, %v244_v11  ;;  %v246_v16 = vld [vmem:[%s1875_s0 + $0x5b8] sm:$0xff] }
  0x71   :  { %v542_v45 = vadd.f32 %v541_v20, %v2033_v1  ;;  %v565_v35 = vadd.f32 %v564_v62, %v2034_v8  ;;  %v611_v6 = vadd.f32 %v610_v57, %v413_v32  ;;  %v523_v22 = vadd.f32 %v522_v34, %v441_v17 }
  0x72   :  { %v633_v58 = vadd.f32 %v632_v5, %v2036_v3  ;;  %v721_v54 = vadd.f32 %v500_v36, %v477_v24  ;;  %v589_v32 = vadd.f32 %v588_v18, %v420_v2  ;;  %v2037_v46 = vand.u32 2147483647, %v1575_v48 }
  0x73   :  { %v543_v44 = vadd.f32 %v542_v45, %v418_v30  ;;  %v566_v61 = vadd.f32 %v565_v35, %v419_v56  ;;  %v612_v19 = vadd.f32 %v611_v6, %v421_v37  ;;  %v437_v17 = vand.u32 2147483647, %v245_v9 }
  0x74   :  { %v634_v30 = vadd.f32 %v633_v58, %v2037_v46  ;;  %v442_v15 = vand.u32 2147483647, %v250_v25  ;;  %v443_v31 = vand.u32 2147483647, %v251_v42  ;;  %v590_v56 = vadd.f32 %v589_v32, %v428_v21 }
  0x75   :  { %v544_v7 = vadd.f32 %v543_v44, %v426_v4  ;;  %v567_v28 = vadd.f32 %v566_v61, %v427_v13  ;;  %v613_v2 = vadd.f32 %v612_v19, %v429_v55  ;;  %v438_v48 = vand.u32 2147483647, %v246_v16 }
  0x76   :  { %v635_v29 = vadd.f32 %v634_v30, %v422_v43  ;;  %v444_v37 = vand.u32 2147483647, %v252_v53  ;;  %v722_v24 = vadd.f32 %v721_v54, %v523_v22  ;;  %v591_v36 = vadd.f32 %v590_v56, %v436_v0 }
  0x77   :  { %v545_v41 = vadd.f32 %v544_v7, %v434_v63  ;;  %v568_v4 = vadd.f32 %v567_v28, %v435_v23  ;;  %v445_v14 = vand.u32 2147483647, %v253_v40  ;;  %v614_v10 = vadd.f32 %v613_v2, %v437_v17 }
  0x78   :  { %v636_v34 = vadd.f32 %v635_v29, %v430_v60  ;;  %v446_v21 = vand.u32 2147483647, %v254_v12  ;;  %v592_v55 = vadd.f32 %v591_v36, %v444_v37 }
  0x79   :  { %v546_v20 = vadd.f32 %v545_v41, %v442_v15  ;;  %v569_v13 = vadd.f32 %v568_v4, %v443_v31  ;;  %v615_v43 = vadd.f32 %v614_v10, %v445_v14 }
  0x7a   :  { %v637_v11 = vadd.f32 %v636_v34, %v438_v48 }
  0x7b   :  { %v723_v47 = vadd.f32 %v722_v24, %v546_v20 }
  0x7c   :  { %v638_v62 = vadd.f32 %v637_v11, %v446_v21 }
  0x7d   :  { %v724_v38 = vadd.f32 %v723_v47, %v569_v13 }
  0x7f   :  { %v725_v49 = vadd.f32 %v724_v38, %v592_v55 }
  0x81   :  { %v726_v50 = vadd.f32 %v725_v49, %v615_v43 }
  0x83   :  { %v727_v52 = vadd.f32 %v726_v50, %v638_v62 }
  0x85   :  { %728 = vadd.xlane.f32.xlu0 %v727_v52 }
 0x112   :  { %v729_v26 = vpop.xlane.xlu0 %728 }
 0x113   :  { %v730_v51 = vrot.slane %v729_v26, 4 }
 0x115   :  { %v731_v57 = vadd.f32 %v730_v51, %v729_v26 }
 0x117   :  { %v732_v27 = vrot.slane %v731_v57, 2 }
 0x119   :  { %v733_v39 = vadd.f32 %v732_v27, %v731_v57 }
 0x11b   :  { %v734_v5 = vrot.slane %v733_v39, 1 }
 0x11d   :  { %v735_v60 = vadd.f32 %v734_v5, %v733_v39 }
 0x11f   :  { %768 = vpush %v735_v60 }
 0x150   :  { %s769_s0 = spop %768 }
 0x151   :  { %738 = sst [smem:[#allocation3]] %s769_s0 }
 0x152   :  { %780 = shalt.err (!%p777_p2)
}
 0x153   :  { %s783_s20 = smov [#allocation3]  }
 0x154   :  { %746 = dma.smem_to_hbm %s783_s20, 16, %s1876_s1, [#allocation4]  }
 0x155   :  { %781 = dma.done.wait [#allocation4], 16  }
 0x156   :  { %782 = vsyncadd [#allocation4], 4294967280 }
 0x157   :  { %750 = sfence }
 0x158   :  { %751 = vsyncpa [#allocation4], 1 }

</bundles_post_ra>
